<compile_context>
chip_gen: v6e
topology: v6e:2x2x1
jax: 0.10.0
libtpu: 0.0.40
codegen_flags: <defaults>
</compile_context>

<pallas_src>
import functools
import itertools

import jax
import jax.numpy as jnp
from jax.experimental import pallas as pl
from jax.experimental.pallas import tpu as pltpu


def _round_up(x, m):
    return (x + m - 1) // m * m


# ----------------------------------------------------------------------------
# Pallas kernel: in-kernel one-hot "embedding gather" + fused MLP + sigmoid
# (transposed layout: features on sublanes, batch on lanes)
# ----------------------------------------------------------------------------
def _wide_and_deep_kernel(
    sparse_ref,   # (Sp,  TB)   int32   sparse ids, transposed (extra rows unused)
    dense_ref,    # (Ddp, TB)   f32/bf16 dense features, transposed, zero-padded
    wide_ref,     # (1,   TB)   f32     precomputed wide (sparse+cross+dense) sum
    fold_ref,     # (Hp, S*Cp)  f32     per-feature Emb_i @ W1_block_i, transposed
    w1d_ref,      # (Hp, Ddp)   f32/bf16 W1 dense block, transposed
    b1_ref,       # (Hp, 1)     f32
    w2t_ref,      # (Hp, Hp)    f32/bf16 W2^T
    b2_ref,       # (Hp, 1)     f32
    w3_ref,       # (Hp, 1)     f32
    bias_ref,     # (1, 1)      f32 SMEM scalar: bw + b3
    out_ref,      # (1, TB)     f32 lane-dense output
    oh_ref,       # (S*Cp, TB)  f32 scratch: stacked per-feature one-hots
    *,
    num_sparse,
    cat_pad,
):
    tb = out_ref.shape[1]

    # Build per-feature one-hot blocks from the streamed int32 ids.  This is
    # the "embedding gather": fold_ref already contains Emb_i @ W1_block_i, so
    # fold @ one_hot selects the embedded-and-projected rows on the MXU.
    for i in range(num_sparse):
        ids = sparse_ref[i:i + 1, :]                                     # (1, TB)
        cls = jax.lax.broadcasted_iota(jnp.int32, (cat_pad, tb), 0)      # (Cp, TB)
        oh_ref[i * cat_pad:(i + 1) * cat_pad, :] = (cls == ids).astype(oh_ref.dtype)

    # Layer 1: sparse (folded) contribution + dense contribution + bias, ReLU.
    h = jnp.dot(fold_ref[...], oh_ref[...], preferred_element_type=jnp.float32)
    h = h + jnp.dot(w1d_ref[...], dense_ref[...], preferred_element_type=jnp.float32)
    h = jnp.maximum(h + b1_ref[...], 0.0)                                # (Hp, TB) f32

    # Layer 2.
    h2 = jnp.dot(w2t_ref[...], h.astype(w2t_ref.dtype),
                 preferred_element_type=jnp.float32)
    h2 = jnp.maximum(h2 + b2_ref[...], 0.0)                              # (Hp, TB) f32

    # H -> 1 projection on VPU multiply + sublane reduce (no M=1 MXU matmul).
    deep = jnp.sum(h2 * w3_ref[...], axis=0, keepdims=True)              # (1, TB)

    logits = deep + wide_ref[...] + bias_ref[0, 0]
    out_ref[...] = jax.nn.sigmoid(logits)


def _fused_forward(sparse_t, dense_t, wide_t, kp, *, num_sparse, cat_pad, tile_b):
    Sp, Bp = sparse_t.shape
    Ddp = dense_t.shape[0]
    Hp = kp["w2t"].shape[0]
    SCp = kp["fold"].shape[1]
    grid = (Bp // tile_b,)

    kernel = functools.partial(
        _wide_and_deep_kernel, num_sparse=num_sparse, cat_pad=cat_pad)

    return pl.pallas_call(
        kernel,
        out_shape=jax.ShapeDtypeStruct((1, Bp), jnp.float32),
        grid=grid,
        in_specs=[
            pl.BlockSpec((Sp, tile_b), lambda i: (0, i)),    # sparse ids tile
            pl.BlockSpec((Ddp, tile_b), lambda i: (0, i)),   # dense^T tile
            pl.BlockSpec((1, tile_b), lambda i: (0, i)),     # wide sum tile
            pl.BlockSpec((Hp, SCp), lambda i: (0, 0)),       # folded W1_sparse (resident)
            pl.BlockSpec((Hp, Ddp), lambda i: (0, 0)),       # W1_dense^T
            pl.BlockSpec((Hp, 1), lambda i: (0, 0)),         # b1
            pl.BlockSpec((Hp, Hp), lambda i: (0, 0)),        # W2^T
            pl.BlockSpec((Hp, 1), lambda i: (0, 0)),         # b2
            pl.BlockSpec((Hp, 1), lambda i: (0, 0)),         # W3
            pl.BlockSpec(memory_space=pltpu.MemorySpace.SMEM),  # scalar bias
        ],
        out_specs=pl.BlockSpec((1, tile_b), lambda i: (0, i)),
        scratch_shapes=[pltpu.VMEM((SCp, tile_b), jnp.float32)],
        compiler_params=pltpu.CompilerParams(
            dimension_semantics=("parallel",),
            vmem_limit_bytes=32 * 1024 * 1024,
        ),
    )(
        sparse_t, dense_t, wide_t,
        kp["fold"], kp["w1d"], kp["b1"], kp["w2t"], kp["b2"], kp["w3"], kp["bias"],
    )


# ----------------------------------------------------------------------------
# Model (parameter construction + minimal JAX glue matching the PyTorch forward)
# ----------------------------------------------------------------------------
class WideAndDeepModel:
    def __init__(self, num_categories, embedding_dim, hidden_units,
                 num_sparse_features, num_dense_features, key,
                 tile_b=2048, use_bf16=False):
        self.num_categories = num_categories
        self.embedding_dim = embedding_dim
        self.hidden_units = hidden_units
        self.num_sparse_features = num_sparse_features
        self.num_dense_features = num_dense_features
        self.tile_b = tile_b
        self.use_bf16 = use_bf16

        C, S, E, D, H = (num_categories, num_sparse_features, embedding_dim,
                         num_dense_features, hidden_units)

        # Cross-feature index tuples, matching the PyTorch module (including
        # its radix = num_sparse_features encoding quirk).
        self.cross_features_indices = []
        for r in range(2, S + 1):
            self.cross_features_indices.extend(itertools.combinations(range(S), r))
        self.num_cross_features = sum(
            C ** len(t) for t in self.cross_features_indices)

        wide_input_dim = C * S + self.num_cross_features + D
        deep_input_dim = E * S + D
        self.wide_input_dim = wide_input_dim
        self.deep_input_dim = deep_input_dim

        # Deterministic synthetic parameter init.
        keys = jax.random.split(key, 9)
        scale = 0.1
        self.params = {
            "ww": scale * jax.random.normal(keys[0], (wide_input_dim, 1), jnp.float32),
            "bw": scale * jax.random.normal(keys[1], (1, 1), jnp.float32),
            "w1": scale * jax.random.normal(keys[2], (deep_input_dim, H), jnp.float32),
            "b1": scale * jax.random.normal(keys[3], (1, H), jnp.float32),
            "w2": scale * jax.random.normal(keys[4], (H, H), jnp.float32),
            "b2": scale * jax.random.normal(keys[5], (1, H), jnp.float32),
            "w3": scale * jax.random.normal(keys[6], (H, 1), jnp.float32),
            "b3": scale * jax.random.normal(keys[7], (1, 1), jnp.float32),
        }
        # nn.Embedding tables, stacked: (S, C, E)
        self.embeddings = jax.random.normal(keys[8], (S, C, E), jnp.float32)

        # Row offsets / class counts for each cross block, and the dense block.
        self.cross_info = []
        off = C * S
        for t in self.cross_features_indices:
            ncls = C ** len(t)
            self.cross_info.append((t, off, ncls))
            off += ncls
        self.dense_wide_offset = off  # == wide_input_dim - D

        # ---- padded kernel parameters (lane-dense, minimal padding) --------
        Hp = _round_up(H, 8)          # hidden dim lives on sublanes / K only
        Cp = _round_up(C, 8)          # per-feature one-hot rows
        Ddp = _round_up(D, 8)         # dense feature rows
        self.Hp, self.Cp, self.Ddp = Hp, Cp, Ddp
        cdtype = jnp.bfloat16 if use_bf16 else jnp.float32
        self.cdtype = cdtype

        w1 = self.params["w1"]                                  # (deep_dim, H)
        # Fold embedding tables into the first layer: fold_i = (Emb_i @ W1_i)^T.
        fold = jnp.zeros((Hp, S * Cp), jnp.float32)
        for i in range(S):
            blk = self.embeddings[i] @ w1[i * E:(i + 1) * E, :]   # (C, H)
            fold = fold.at[:H, i * Cp:i * Cp + C].set(blk.T)
        w1d = jnp.zeros((Hp, Ddp), jnp.float32).at[:H, :D].set(w1[E * S:, :].T)
        b1 = jnp.zeros((Hp, 1), jnp.float32).at[:H, 0].set(self.params["b1"][0])
        w2t = jnp.zeros((Hp, Hp), jnp.float32).at[:H, :H].set(self.params["w2"].T)
        b2 = jnp.zeros((Hp, 1), jnp.float32).at[:H, 0].set(self.params["b2"][0])
        w3 = jnp.zeros((Hp, 1), jnp.float32).at[:H, :].set(self.params["w3"])
        bias = (self.params["bw"] + self.params["b3"]).reshape(1, 1)

        self.kernel_params = {
            "fold": fold,                       # keep f32 (tiny, resident)
            "w1d": w1d.astype(cdtype),
            "b1": b1,
            "w2t": w2t.astype(cdtype),
            "b2": b2,
            "w3": w3,
            "bias": bias,
        }

    # -- glue: wide gather-sum + transposed/padded streaming inputs ----------
    def _build_kernel_inputs(self, sparse_inputs, dense_inputs):
        C, S, D = self.num_categories, self.num_sparse_features, self.num_dense_features
        B = sparse_inputs.shape[0]
        ww_col = self.params["ww"][:, 0]

        # Wide branch: direct one-hot part as a gather-sum.
        feat_off = jnp.arange(S, dtype=jnp.int32) * C
        wide = jnp.sum(jnp.take(ww_col, sparse_inputs + feat_off[None, :], axis=0),
                       axis=1)                                             # (B,)
        # Cross one-hot part, masked to match one_hot semantics exactly
        # (out-of-range cross ids -> zero contribution).
        for (t, off, ncls) in self.cross_info:
            cid = sparse_inputs[:, t[0]]
            for j in t[1:]:
                cid = cid * S + sparse_inputs[:, j]        # radix = S (ref quirk)
            val = jnp.take(ww_col, off + jnp.clip(cid, 0, ncls - 1), axis=0)
            wide = wide + jnp.where(cid < ncls, val, 0.0)
        # Dense part of the wide branch (kept f32).
        ww_dense = ww_col[self.dense_wide_offset:self.dense_wide_offset + D]
        wide = wide + dense_inputs @ ww_dense                               # (B,)

        # Streaming inputs, built directly into padded transposed buffers.
        Bp = _round_up(max(B, 1), self.tile_b)
        Sp = _round_up(S, 8)
        sparse_t = jnp.zeros((Sp, Bp), jnp.int32).at[:S, :B].set(sparse_inputs.T)
        dense_t = jnp.zeros((self.Ddp, Bp), self.cdtype).at[:D, :B].set(
            dense_inputs.T.astype(self.cdtype))
        wide_t = jnp.zeros((1, Bp), jnp.float32).at[0, :B].set(wide)
        return sparse_t, dense_t, wide_t

    @functools.partial(jax.jit, static_argnums=0)
    def forward(self, sparse_inputs, dense_inputs):
        B = sparse_inputs.shape[0]
        sparse_t, dense_t, wide_t = self._build_kernel_inputs(sparse_inputs, dense_inputs)
        out = _fused_forward(sparse_t, dense_t, wide_t, self.kernel_params,
                             num_sparse=self.num_sparse_features,
                             cat_pad=self.Cp, tile_b=self.tile_b)
        return out[0, :B].reshape(B, 1)

    # Pure-JAX reference (one-hot matmul path, no Pallas) for correctness.
    def forward_ref(self, sparse_inputs, dense_inputs):
        C, S = self.num_categories, self.num_sparse_features
        one_hot = jnp.concatenate(
            [jax.nn.one_hot(sparse_inputs[:, i], C, dtype=jnp.float32)
             for i in range(S)], axis=1)
        cross = []
        for t in self.cross_features_indices:
            cid = sparse_inputs[:, t[0]]
            for j in t[1:]:
                cid = cid * S + sparse_inputs[:, j]
            cross.append(jax.nn.one_hot(cid, C ** len(t), dtype=jnp.float32))
        if cross:
            wide_input = jnp.concatenate(
                [one_hot, jnp.concatenate(cross, axis=1), dense_inputs], axis=1)
        else:
            wide_input = jnp.concatenate([one_hot, dense_inputs], axis=1)
        p = self.params
        wide_out = wide_input @ p["ww"] + p["bw"]
        emb = jnp.concatenate(
            [self.embeddings[i][sparse_inputs[:, i]] for i in range(S)], axis=1)
        deep_input = jnp.concatenate([emb, dense_inputs], axis=1)
        h = jnp.maximum(deep_input @ p["w1"] + p["b1"], 0.0)
        h = jnp.maximum(h @ p["w2"] + p["b2"], 0.0)
        deep_out = h @ p["w3"] + p["b3"]
        return jax.nn.sigmoid(wide_out + deep_out)


# ----------------------------------------------------------------------------
if __name__ == "__main__":
    key = jax.random.PRNGKey(0)
    k_model, k_sparse, k_dense = jax.random.split(key, 3)

    # Small config consistent with the module's constructor.
    num_categories = 4
    embedding_dim = 8
    hidden_units = 32
    num_sparse_features = 3
    num_dense_features = 5
    batch = 8

    sparse_inputs = jax.random.randint(
        k_sparse, (batch, num_sparse_features), 0, num_categories, dtype=jnp.int32)
    dense_inputs = jax.random.normal(
        k_dense, (batch, num_dense_features), dtype=jnp.float32)

    # f32 path: strict parity with the pure-JAX reference.
    model_f32 = WideAndDeepModel(num_categories, embedding_dim, hidden_units,
                                 num_sparse_features, num_dense_features, k_model,
                                 tile_b=2048, use_bf16=False)
    out_f32 = jax.block_until_ready(model_f32.forward(sparse_inputs, dense_inputs))
    ref = model_f32.forward_ref(sparse_inputs, dense_inputs)
    assert out_f32.shape == (batch, 1)
    assert jnp.allclose(out_f32, ref, atol=1e-5, rtol=1e-5), "f32 mismatch vs reference"

    # bf16-stream path (same weights, same key): looser tolerance by design.
    model_bf16 = WideAndDeepModel(num_categories, embedding_dim, hidden_units,
                                  num_sparse_features, num_dense_features, k_model,
                                  tile_b=2048, use_bf16=True)
    out_bf16 = jax.block_until_ready(model_bf16.forward(sparse_inputs, dense_inputs))
    assert out_bf16.shape == (batch, 1)
    assert jnp.allclose(out_bf16, ref, atol=5e-2, rtol=5e-2), "bf16 mismatch vs reference"

    print("KERNEL_OK")
</pallas_src>

<mosaic_0001>
module attributes {stable_mosaic.version = 11 : i64} {
  func.func @_wide_and_deep_kernel(%arg0: i32, %arg1: memref<8x2048xi32, #tpu.memory_space<vmem>>, %arg2: memref<8x2048xf32, #tpu.memory_space<vmem>>, %arg3: memref<1x2048xf32, #tpu.memory_space<vmem>>, %arg4: memref<32x24xf32, #tpu.memory_space<vmem>>, %arg5: memref<32x8xf32, #tpu.memory_space<vmem>>, %arg6: memref<32x1xf32, #tpu.memory_space<vmem>>, %arg7: memref<32x32xf32, #tpu.memory_space<vmem>>, %arg8: memref<32x1xf32, #tpu.memory_space<vmem>>, %arg9: memref<32x1xf32, #tpu.memory_space<vmem>>, %arg10: memref<1x1xf32, #tpu.memory_space<smem>>, %arg11: memref<1x2048xf32, #tpu.memory_space<vmem>>, %arg12: memref<24x2048xf32, #tpu.memory_space<vmem>>) attributes {dimension_semantics = [#tpu.dimension_semantics<parallel>], iteration_bounds = array<i64: 1>, scalar_prefetch = 0 : i64, scratch_operands = 1 : i64, tpu.core_type = #tpu.core_type<tc>, window_params = [{transform_indices = @transform_0, window_bounds = array<i64: 8, 2048>}, {transform_indices = @transform_1, window_bounds = array<i64: 8, 2048>}, {transform_indices = @transform_2, window_bounds = array<i64: 1, 2048>}, {pipeline_mode = #tpu.pipeline_mode<synchronous>, transform_indices = @transform_3, window_bounds = array<i64: 32, 24>}, {pipeline_mode = #tpu.pipeline_mode<synchronous>, transform_indices = @transform_4, window_bounds = array<i64: 32, 8>}, {pipeline_mode = #tpu.pipeline_mode<synchronous>, transform_indices = @transform_5, window_bounds = array<i64: 32, 1>}, {pipeline_mode = #tpu.pipeline_mode<synchronous>, transform_indices = @transform_6, window_bounds = array<i64: 32, 32>}, {pipeline_mode = #tpu.pipeline_mode<synchronous>, transform_indices = @transform_7, window_bounds = array<i64: 32, 1>}, {pipeline_mode = #tpu.pipeline_mode<synchronous>, transform_indices = @transform_8, window_bounds = array<i64: 32, 1>}, {transform_indices = @transform_9, window_bounds = array<i64: 1, 1>}, {transform_indices = @transform_10, window_bounds = array<i64: 1, 2048>}]} {
    %c0 = arith.constant 0 : index
    %c0_0 = arith.constant 0 : index
    %0 = vector.load %arg1[%c0, %c0_0] : memref<8x2048xi32, #tpu.memory_space<vmem>>, vector<1x2048xi32>
    %1 = tpu.iota {dimensions = array<i32: 0>} : vector<8x2048xi32>
    %2 = vector.broadcast %0 : vector<1x2048xi32> to vector<8x2048xi32>
    %3 = arith.cmpi eq, %1, %2 : vector<8x2048xi32>
    %4 = arith.extui %3 : vector<8x2048xi1> to vector<8x2048xi32>
    %5 = arith.sitofp %4 : vector<8x2048xi32> to vector<8x2048xf32>
    %c0_1 = arith.constant 0 : index
    %c0_2 = arith.constant 0 : index
    %6 = vector.load %arg12[%c0_1, %c0_2] : memref<24x2048xf32, #tpu.memory_space<vmem>>, vector<8x2048xf32>
    tpu.vector_store %arg12[%c0_1, %c0_2], %5 {strides = array<i32>} : memref<24x2048xf32, #tpu.memory_space<vmem>>, vector<8x2048xf32>,
    %c1 = arith.constant 1 : index
    %c0_3 = arith.constant 0 : index
    %7 = vector.load %arg1[%c1, %c0_3] : memref<8x2048xi32, #tpu.memory_space<vmem>>, vector<1x2048xi32>
    %8 = tpu.iota {dimensions = array<i32: 0>} : vector<8x2048xi32>
    %9 = vector.broadcast %7 : vector<1x2048xi32> to vector<8x2048xi32>
    %10 = arith.cmpi eq, %8, %9 : vector<8x2048xi32>
    %11 = arith.extui %10 : vector<8x2048xi1> to vector<8x2048xi32>
    %12 = arith.sitofp %11 : vector<8x2048xi32> to vector<8x2048xf32>
    %c8 = arith.constant 8 : index
    %c0_4 = arith.constant 0 : index
    %13 = vector.load %arg12[%c8, %c0_4] : memref<24x2048xf32, #tpu.memory_space<vmem>>, vector<8x2048xf32>
    tpu.vector_store %arg12[%c8, %c0_4], %12 {strides = array<i32>} : memref<24x2048xf32, #tpu.memory_space<vmem>>, vector<8x2048xf32>,
    %c2 = arith.constant 2 : index
    %c0_5 = arith.constant 0 : index
    %14 = vector.load %arg1[%c2, %c0_5] : memref<8x2048xi32, #tpu.memory_space<vmem>>, vector<1x2048xi32>
    %15 = tpu.iota {dimensions = array<i32: 0>} : vector<8x2048xi32>
    %16 = vector.broadcast %14 : vector<1x2048xi32> to vector<8x2048xi32>
    %17 = arith.cmpi eq, %15, %16 : vector<8x2048xi32>
    %18 = arith.extui %17 : vector<8x2048xi1> to vector<8x2048xi32>
    %19 = arith.sitofp %18 : vector<8x2048xi32> to vector<8x2048xf32>
    %c16 = arith.constant 16 : index
    %c0_6 = arith.constant 0 : index
    %20 = vector.load %arg12[%c16, %c0_6] : memref<24x2048xf32, #tpu.memory_space<vmem>>, vector<8x2048xf32>
    tpu.vector_store %arg12[%c16, %c0_6], %19 {strides = array<i32>} : memref<24x2048xf32, #tpu.memory_space<vmem>>, vector<8x2048xf32>,
    %c0_7 = arith.constant 0 : index
    %c0_8 = arith.constant 0 : index
    %21 = vector.load %arg4[%c0_7, %c0_8] : memref<32x24xf32, #tpu.memory_space<vmem>>, vector<32x24xf32>
    %c0_9 = arith.constant 0 : index
    %c0_10 = arith.constant 0 : index
    %22 = vector.load %arg12[%c0_9, %c0_10] : memref<24x2048xf32, #tpu.memory_space<vmem>>, vector<24x2048xf32>
    %cst = arith.constant dense<0.000000e+00> : vector<32x2048xf32>
    %23 = tpu.matmul %21, %22, %cst {dimension_numbers = #tpu.dot_dimension_numbers<[1], [0], [0], [1], [0, 0, 1, 1], [], []>} : vector<32x24xf32>, vector<24x2048xf32>, vector<32x2048xf32> -> vector<32x2048xf32>
    %c0_11 = arith.constant 0 : index
    %c0_12 = arith.constant 0 : index
    %24 = vector.load %arg5[%c0_11, %c0_12] : memref<32x8xf32, #tpu.memory_space<vmem>>, vector<32x8xf32>
    %c0_13 = arith.constant 0 : index
    %c0_14 = arith.constant 0 : index
    %25 = vector.load %arg2[%c0_13, %c0_14] : memref<8x2048xf32, #tpu.memory_space<vmem>>, vector<8x2048xf32>
    %cst_15 = arith.constant dense<0.000000e+00> : vector<32x2048xf32>
    %26 = tpu.matmul %24, %25, %cst_15 {dimension_numbers = #tpu.dot_dimension_numbers<[1], [0], [0], [1], [0, 0, 1, 1], [], []>} : vector<32x8xf32>, vector<8x2048xf32>, vector<32x2048xf32> -> vector<32x2048xf32>
    %27 = arith.addf %23, %26 : vector<32x2048xf32>
    %c0_16 = arith.constant 0 : index
    %c0_17 = arith.constant 0 : index
    %28 = vector.load %arg6[%c0_16, %c0_17] : memref<32x1xf32, #tpu.memory_space<vmem>>, vector<32x1xf32>
    %29 = vector.broadcast %28 : vector<32x1xf32> to vector<32x2048xf32>
    %30 = arith.addf %27, %29 : vector<32x2048xf32>
    %cst_18 = arith.constant 0.000000e+00 : f32
    %31 = vector.broadcast %cst_18 : f32 to vector<32x2048xf32>
    %32 = arith.maximumf %30, %31 : vector<32x2048xf32>
    %c0_19 = arith.constant 0 : index
    %c0_20 = arith.constant 0 : index
    %33 = vector.load %arg7[%c0_19, %c0_20] : memref<32x32xf32, #tpu.memory_space<vmem>>, vector<32x32xf32>
    %cst_21 = arith.constant dense<0.000000e+00> : vector<32x2048xf32>
    %34 = tpu.matmul %33, %32, %cst_21 {dimension_numbers = #tpu.dot_dimension_numbers<[1], [0], [0], [1], [0, 0, 1, 1], [], []>} : vector<32x32xf32>, vector<32x2048xf32>, vector<32x2048xf32> -> vector<32x2048xf32>
    %c0_22 = arith.constant 0 : index
    %c0_23 = arith.constant 0 : index
    %35 = vector.load %arg8[%c0_22, %c0_23] : memref<32x1xf32, #tpu.memory_space<vmem>>, vector<32x1xf32>
    %36 = vector.broadcast %35 : vector<32x1xf32> to vector<32x2048xf32>
    %37 = arith.addf %34, %36 : vector<32x2048xf32>
    %cst_24 = arith.constant 0.000000e+00 : f32
    %38 = vector.broadcast %cst_24 : f32 to vector<32x2048xf32>
    %39 = arith.maximumf %37, %38 : vector<32x2048xf32>
    %c0_25 = arith.constant 0 : index
    %c0_26 = arith.constant 0 : index
    %40 = vector.load %arg9[%c0_25, %c0_26] : memref<32x1xf32, #tpu.memory_space<vmem>>, vector<32x1xf32>
    %41 = vector.broadcast %40 : vector<32x1xf32> to vector<32x2048xf32>
    %42 = arith.mulf %39, %41 : vector<32x2048xf32>
    %cst_27 = arith.constant dense<0.000000e+00> : vector<2048xf32>
    %43 = vector.multi_reduction <add>, %42, %cst_27 [0] : vector<32x2048xf32> to vector<2048xf32>
    %44 = vector.shape_cast %43 : vector<2048xf32> to vector<1x2048xf32>
    %c0_28 = arith.constant 0 : index
    %c0_29 = arith.constant 0 : index
    %45 = vector.load %arg3[%c0_28, %c0_29] : memref<1x2048xf32, #tpu.memory_space<vmem>>, vector<1x2048xf32>
    %46 = arith.addf %44, %45 : vector<1x2048xf32>
    %c0_30 = arith.constant 0 : index
    %c0_31 = arith.constant 0 : index
    %47 = memref.load %arg10[%c0_30, %c0_31] : memref<1x1xf32, #tpu.memory_space<smem>>
    %48 = vector.broadcast %47 : f32 to vector<1x2048xf32>
    %49 = arith.addf %46, %48 : vector<1x2048xf32>
    %50 = arith.negf %49 : vector<1x2048xf32>
    %51 = math.exp %50 : vector<1x2048xf32>
    %cst_32 = arith.constant 1.000000e+00 : f32
    %52 = vector.broadcast %cst_32 : f32 to vector<1x2048xf32>
    %53 = arith.addf %52, %51 : vector<1x2048xf32>
    %54 = arith.divf %52, %53 : vector<1x2048xf32>
    %c0_33 = arith.constant 0 : index
    %c0_34 = arith.constant 0 : index
    %55 = vector.load %arg11[%c0_33, %c0_34] : memref<1x2048xf32, #tpu.memory_space<vmem>>, vector<1x2048xf32>
    tpu.vector_store %arg11[%c0_33, %c0_34], %54 {strides = array<i32>} : memref<1x2048xf32, #tpu.memory_space<vmem>>, vector<1x2048xf32>,
    return
  }
  func.func @transform_0(%arg0: i32) -> (i32, i32) {
    %c0_i32 = arith.constant 0 : i32
    %c0_i32_0 = arith.constant 0 : i32
    return %c0_i32, %arg0 : i32, i32
  }
  func.func @transform_1(%arg0: i32) -> (i32, i32) {
    %c0_i32 = arith.constant 0 : i32
    %c0_i32_0 = arith.constant 0 : i32
    return %c0_i32, %arg0 : i32, i32
  }
  func.func @transform_2(%arg0: i32) -> (i32, i32) {
    %c0_i32 = arith.constant 0 : i32
    %c0_i32_0 = arith.constant 0 : i32
    return %c0_i32, %arg0 : i32, i32
  }
  func.func @transform_3(%arg0: i32) -> (i32, i32) {
    %c0_i32 = arith.constant 0 : i32
    %c0_i32_0 = arith.constant 0 : i32
    %c0_i32_1 = arith.constant 0 : i32
    return %c0_i32, %c0_i32_0 : i32, i32
  }
  func.func @transform_4(%arg0: i32) -> (i32, i32) {
    %c0_i32 = arith.constant 0 : i32
    %c0_i32_0 = arith.constant 0 : i32
    %c0_i32_1 = arith.constant 0 : i32
    return %c0_i32, %c0_i32_0 : i32, i32
  }
  func.func @transform_5(%arg0: i32) -> (i32, i32) {
    %c0_i32 = arith.constant 0 : i32
    %c0_i32_0 = arith.constant 0 : i32
    %c0_i32_1 = arith.constant 0 : i32
    return %c0_i32, %c0_i32_0 : i32, i32
  }
  func.func @transform_6(%arg0: i32) -> (i32, i32) {
    %c0_i32 = arith.constant 0 : i32
    %c0_i32_0 = arith.constant 0 : i32
    %c0_i32_1 = arith.constant 0 : i32
    return %c0_i32, %c0_i32_0 : i32, i32
  }
  func.func @transform_7(%arg0: i32) -> (i32, i32) {
    %c0_i32 = arith.constant 0 : i32
    %c0_i32_0 = arith.constant 0 : i32
    %c0_i32_1 = arith.constant 0 : i32
    return %c0_i32, %c0_i32_0 : i32, i32
  }
  func.func @transform_8(%arg0: i32) -> (i32, i32) {
    %c0_i32 = arith.constant 0 : i32
    %c0_i32_0 = arith.constant 0 : i32
    %c0_i32_1 = arith.constant 0 : i32
    return %c0_i32, %c0_i32_0 : i32, i32
  }
  func.func @transform_9(%arg0: i32) -> (i32, i32) {
    %c0_i32 = arith.constant 0 : i32
    %c0_i32_0 = arith.constant 0 : i32
    %c0_i32_1 = arith.constant 0 : i32
    return %c0_i32, %c0_i32_0 : i32, i32
  }
  func.func @transform_10(%arg0: i32) -> (i32, i32) {
    %c0_i32 = arith.constant 0 : i32
    %c0_i32_0 = arith.constant 0 : i32
    return %c0_i32, %arg0 : i32, i32
  }
}

</mosaic_0001>

<bundles_post_ra>
// kernel: forward.1
= control target key start
LH: loop header
LB: loop body
LE: loop exit
PB: predicated region body
PF: predicated region fallthrough
CT: control target
= control target key end

     0   :  { %v5178_v3 = vmov 0.0   ;;  %vm517_vm0 = vcmask 64512   ;;  %v3793_v14 = vmov 0   ;;  %v43_v23 = vlaneseq  ;;  %s5167_s1 = inlined_call_operand.vmem [shape: f32[8,2048], index: 1, kind: input, shape index: {}]   ;;  %s5168_s4 = inlined_call_operand.vmem [shape: f32[32,8], index: 4, kind: input, shape index: {}]   ;;  %s5169_s5 = inlined_call_operand.vmem [shape: f32[32,1], index: 5, kind: input, shape index: {}]   ;;  %s5170_s7 = inlined_call_operand.vmem [shape: f32[32,1], index: 7, kind: input, shape index: {}]   ;;  %s5171_s0 = inlined_call_operand.vmem [shape: s32[8,2048], index: 0, kind: input, shape index: {}]   ;;  %s5172_s8 = inlined_call_operand.vmem [shape: f32[32,1], index: 8, kind: input, shape index: {}]   ;;  %s5173_s3 = inlined_call_operand.vmem [shape: f32[32,24], index: 3, kind: input, shape index: {}]   ;;  %s5174_s6 = inlined_call_operand.vmem [shape: f32[32,32], index: 6, kind: input, shape index: {}]   ;;  %s5175_s2 = inlined_call_operand.vmem [shape: f32[1,2048], index: 2, kind: input, shape index: {}]   ;;  %s5176_s9 = inlined_call_operand.<no memory space> [shape: f32[1,1], index: 9, kind: input, shape index: {}]   ;;  %s5177_s10 = inlined_call_operand.vmem [shape: f32[1,2048], index: 10, kind: output, shape index: {}]  }
   0x1   :  { %v502_v0 = vld [vmem:[%s5167_s1 + $0x8] sm:$0xff]  ;;  %v504_v1 = vld [vmem:[%s5167_s1 + $0x18] sm:$0xff]  ;;  %v501_v2 = vld [vmem:[%s5167_s1] sm:$0xff]  ;;  %594 = vmatprep.mubr.f32.mxu0 %v5178_v3  ;;  %683 = vmatprep.mubr.f32.mxu1 %v5178_v3  ;;  %v3794_v40 = vmov 1.0   ;;  %vm1242_vm15 = vcmask 195584  }
   0x2   :  { %560 = vmatprep.subr.mxu0 %v502_v0  ;;  %649 = vmatprep.subr.mxu1 %v504_v1  ;;  %v503_v4 = vld [vmem:[%s5167_s1 + $0x10] sm:$0xff]  ;;  %v3868_v5 = vld [vmem:[%s5168_s4] sm:$0xff]  ;;  %v506_v6 = vld [vmem:[%s5167_s1 + $0x28] sm:$0xff]  ;;  %v3964_v26 = vshrl.u32 %v43_v23, 7 }
   0x3   :  { %561 = vmatpush1.msra.mxu0 %v501_v2  ;;  %650 = vmatpush1.msra.mxu1 %v503_v4  ;;  %v508_v7 = vld [vmem:[%s5167_s1 + $0x38] sm:$0xff]  ;;  %v505_v8 = vld [vmem:[%s5167_s1 + $0x20] sm:$0xff]  ;;  %v507_v9 = vld [vmem:[%s5167_s1 + $0x30] sm:$0xff] }
   0x4   :  { %3562 = vmatmul.mubr.msk.f32.vlgmr.msra.gmra.mxu0 %vm517_vm0, %v3868_v5  ;;  %3566 = vmatmul.mubr.msk.f32.vlgmr.msra.gmra.mxu1 %vm517_vm0, %v3868_v5  ;;  %v3891_v10 = vld [vmem:[%s5168_s4 + $0x8] sm:$0xff]  ;;  %v512_v12 = vld [vmem:[%s5167_s1 + $0x58] sm:$0xff]  ;;  %v3908_v13 = vld [vmem:[%s5168_s4 + $0x10] sm:$0xff]  ;;  %5197 = vst [vmem:[#allocation4_spill] sm:$0xff] %v3964_v26  ;;  %v3982_v30 = vsub.s32 1, %v3964_v26  ;;  %v3987_v32 = vsub.s32 3, %v3964_v26 }
   0x5   :  { %600 = vmatprep.mubr.f32.mxu0 %v5178_v3  ;;  %689 = vmatprep.mubr.f32.mxu1 %v5178_v3  ;;  %v510_v11 = vld [vmem:[%s5167_s1 + $0x48] sm:$0xff]  ;;  %v3919_v15 = vld [vmem:[%s5168_s4 + $0x18] sm:$0xff]  ;;  %v1969_v18 = vld [vmem:[%s5169_s5 + $0x10] sm:$0xff]  ;;  %v4045_v45 = vsub.s32 0, %v3964_v26  ;;  %v4048_v46 = vsub.s32 2, %v3964_v26  ;;  %v4086_v57 = vsub.s32 5, %v3964_v26 }
   0x6   :  { %738 = vmatprep.subr.mxu0 %v506_v6  ;;  %827 = vmatprep.subr.mxu1 %v508_v7  ;;  %v1970_v16 = vld [vmem:[%s5169_s5 + $0x18] sm:$0xff]  ;;  %v1968_v17 = vld [vmem:[%s5169_s5 + $0x8] sm:$0xff]  ;;  %v509_v19 = vld [vmem:[%s5167_s1 + $0x40] sm:$0xff]  ;;  %5198 = vst [vmem:[#allocation5_spill] sm:$0xff] %v3982_v30  ;;  %v4103_v61 = vsub.s32 7, %v3964_v26  ;;  %v4132_v2 = vsub.s32 4, %v3964_v26 }
   0x7   :  { %739 = vmatpush1.msra.mxu0 %v505_v8  ;;  %828 = vmatpush1.msra.mxu1 %v507_v9  ;;  %v511_v20 = vld [vmem:[%s5167_s1 + $0x50] sm:$0xff]  ;;  %v514_v21 = vld [vmem:[%s5167_s1 + $0x68] sm:$0xff]  ;;  %v516_v22 = vld [vmem:[%s5167_s1 + $0x78] sm:$0xff]  ;;  %5199 = vst [vmem:[#allocation6_spill] sm:$0xff] %v3987_v32  ;;  %v4139_v4 = vsub.s32 6, %v3964_v26 }
   0x8   :  { %3563 = vmatmul.mubr.msk.f32.gmra.mxu0 %vm517_vm0, %v3891_v10  ;;  %3567 = vmatmul.mubr.msk.f32.gmra.mxu1 %vm517_vm0, %v3891_v10  ;;  %v1967_v24 = vld [vmem:[%s5169_s5] sm:$0xff]  ;;  %v2125_v29 = vld [vmem:[%s5170_s7 + $0x10] sm:$0xff]  ;;  %v2124_v33 = vld [vmem:[%s5170_s7 + $0x8] sm:$0xff]  ;;  %5200 = vst [vmem:[#allocation7_spill] sm:$0xff] %v4045_v45 }
   0x9   :  { %606 = vmatprep.mubr.f32.mxu0 %v5178_v3  ;;  %695 = vmatprep.mubr.f32.mxu1 %v5178_v3  ;;  %v2123_v25 = vld [vmem:[%s5170_s7] sm:$0xff]  ;;  %v2126_v37 = vld [vmem:[%s5170_s7 + $0x18] sm:$0xff]  ;;  %v515_v39 = vld [vmem:[%s5167_s1 + $0x70] sm:$0xff]  ;;  %5201 = vst [vmem:[#allocation8_spill] sm:$0xff] %v4048_v46 }
   0xa   :  { %916 = vmatprep.subr.mxu0 %v510_v11  ;;  %1005 = vmatprep.subr.mxu1 %v512_v12  ;;  %v3542_v27 = vld [vmem:[%s5171_s0 + $0x2] ss:$8 sm:$0xf]  ;;  %v3522_v43 = vld [vmem:[%s5171_s0 + $0x1] ss:$8 sm:$0xf] }
   0xb   :  { %3726 = vset.pattern.permute.xlu0 %v3793_v14  ;;  %3727 = vset.pattern.permute.xlu1 %v3793_v14  ;;  %v3543_v28 = vld [vmem:[%s5171_s0 + $0x2] ss:$8 sm:$0xf0]  ;;  %v3523_v44 = vld [vmem:[%s5171_s0 + $0x1] ss:$8 sm:$0xf0] }
   0xc   :  { %3564 = vmatmul.mubr.msk.f32.gmra.mxu0 %vm517_vm0, %v3908_v13  ;;  %3568 = vmatmul.mubr.msk.f32.gmra.mxu1 %vm517_vm0, %v3908_v13  ;;  %v3984_v31 = vor.u32 %v3543_v28, %v3542_v27  ;;  %v2936_v34 = vld [vmem:[%s5172_s8] sm:$0xff]  ;;  %v2938_v41 = vld [vmem:[%s5172_s8 + $0x10] sm:$0xff]  ;;  %v2937_v42 = vld [vmem:[%s5172_s8 + $0x8] sm:$0xff]  ;;  %v4050_v47 = vor.u32 %v3523_v44, %v3522_v43  ;;  %5202 = vst [vmem:[#allocation9_spill] sm:$0xff] %v4086_v57 }
   0xd   :  { %612 = vmatprep.mubr.f32.mxu0 %v5178_v3  ;;  %701 = vmatprep.mubr.f32.mxu1 %v5178_v3  ;;  %v513_v38 = vld [vmem:[%s5167_s1 + $0x60] sm:$0xff]  ;;  %v2939_v48 = vld [vmem:[%s5172_s8 + $0x18] sm:$0xff]  ;;  %5203 = vst [vmem:[#allocation10_spill] sm:$0xff] %v4103_v61  ;;  %5204 = vst [vmem:[#allocation11_spill] sm:$0xff] %v4132_v2 }
   0xe   :  { %1988 = vperm.xlu0 %3726, %v1970_v16   ;;  %1978 = vperm.xlu1 %3727, %v1968_v17   ;;  %v324_v35 = vrot.slane %v3984_v31, %v3982_v30  ;;  %v332_v36 = vrot.slane %v3984_v31, %v3987_v32  ;;  %v36_v49 = vld [vmem:[%s5171_s0] ss:$8 sm:$0xf]  ;;  %v320_v51 = vrot.slane %v3984_v31, %v4045_v45  ;;  %v3545_v11 = vld [vmem:[%s5171_s0 + $0x42] ss:$8 sm:$0xf0] }
   0xf   :  { %v37_v50 = vld [vmem:[%s5171_s0] ss:$8 sm:$0xf0]  ;;  %v328_v52 = vrot.slane %v3984_v31, %v4048_v46  ;;  %v188_v53 = vrot.slane %v4050_v47, %v3982_v30  ;;  %v196_v54 = vrot.slane %v4050_v47, %v3987_v32  ;;  %v184_v56 = vrot.slane %v4050_v47, %v4045_v45  ;;  %5205 = vst [vmem:[#allocation12_spill] sm:$0xff] %v4139_v4 }
  0x10   :  { %3565 = vmatmul.mubr.msk.f32.gmra.mxu0 %vm517_vm0, %v3919_v15  ;;  %3569 = vmatmul.mubr.msk.f32.gmra.mxu1 %vm517_vm0, %v3919_v15  ;;  %vm382_vm1 = vcmp.eq.s32.totalorder %v3964_v26, %v324_v35  ;;  %vm384_vm2 = vcmp.eq.s32.totalorder %v3964_v26, %v332_v36  ;;  %v4079_v55 = vor.u32 %v37_v50, %v36_v49  ;;  %v4166_v8 = vld [vmem:[%s5173_s3] sm:$0xff]  ;;  %v4201_v17 = vld [vmem:[%s5173_s3 + $0x8] sm:$0xff]  ;;  %v4257_v28 = vld [vmem:[%s5173_s3 + $0x18] sm:$0xff] }
  0x11   :  { %772 = vmatprep.mubr.f32.mxu0 %v5178_v3  ;;  %861 = vmatprep.mubr.f32.mxu1 %v5178_v3  ;;  %vm381_vm3 = vcmp.eq.s32.totalorder %v3964_v26, %v320_v51  ;;  %vm383_vm4 = vcmp.eq.s32.totalorder %v3964_v26, %v328_v52  ;;  %vm246_vm5 = vcmp.eq.s32.totalorder %v3964_v26, %v188_v53  ;;  %v3524_v23 = vld [vmem:[%s5171_s0 + $0x41] ss:$8 sm:$0xf] }
  0x12   :  { %1983 = vperm.xlu0 %3726, %v1969_v18   ;;  %1973 = vperm.xlu1 %3727, %v1967_v24   ;;  %v192_v58 = vrot.slane %v4050_v47, %v4048_v46  ;;  %vm248_vm6 = vcmp.eq.s32.totalorder %v3964_v26, %v196_v54  ;;  %v52_v59 = vrot.slane %v4079_v55, %v3982_v30  ;;  %v3525_v24 = vld [vmem:[%s5171_s0 + $0x41] ss:$8 sm:$0xf0] }
  0x13   :  { %v60_v60 = vrot.slane %v4079_v55, %v3987_v32  ;;  %vm245_vm7 = vcmp.eq.s32.totalorder %v3964_v26, %v184_v56  ;;  %v340_v62 = vrot.slane %v3984_v31, %v4086_v57  ;;  %v48_v63 = vrot.slane %v4079_v55, %v4045_v45 }
  0x14   :  { %3570 = vmatmul.mubr.msk.f32.vlgmr.msra.gmra.mxu0 %vm517_vm0, %v3868_v5  ;;  %3574 = vmatmul.mubr.msk.f32.vlgmr.msra.gmra.mxu1 %vm517_vm0, %v3868_v5  ;;  %vm247_vm8 = vcmp.eq.s32.totalorder %v3964_v26, %v192_v58  ;;  %v56_v0 = vrot.slane %v4079_v55, %v4048_v46  ;;  %vm110_vm9 = vcmp.eq.s32.totalorder %v3964_v26, %v52_v59 }
  0x15   :  { %778 = vmatprep.mubr.f32.mxu0 %v5178_v3  ;;  %867 = vmatprep.mubr.f32.mxu1 %v5178_v3  ;;  %vm112_vm10 = vcmp.eq.s32.totalorder %v3964_v26, %v60_v60  ;;  %v348_v1 = vrot.slane %v3984_v31, %v4103_v61  ;;  %vm109_vm11 = vcmp.eq.s32.totalorder %v3964_v26, %v48_v63 }
  0x16   :  { %917 = vmatpush1.msra.mxu0 %v509_v19  ;;  %1006 = vmatpush1.msra.mxu1 %v511_v20  ;;  %vm111_vm12 = vcmp.eq.s32.totalorder %v3964_v26, %v56_v0  ;;  %vm386_vm13 = vcmp.eq.s32.totalorder %v3964_v26, %v340_v62  ;;  %v344_v6 = vrot.slane %v3984_v31, %v4139_v4 }
  0x17   :  { %1094 = vmatprep.subr.mxu0 %v514_v21  ;;  %1183 = vmatprep.subr.mxu1 %v516_v22  ;;  %vm388_vm14 = vcmp.eq.s32.totalorder %v3964_v26, %v348_v1  ;;  %v204_v7 = vrot.slane %v4050_v47, %v4086_v57  ;;  %v212_v9 = vrot.slane %v4050_v47, %v4103_v61 }
  0x18   :  { %3571 = vmatmul.mubr.msk.f32.gmra.mxu0 %vm517_vm0, %v3891_v10  ;;  %3575 = vmatmul.mubr.msk.f32.gmra.mxu1 %vm517_vm0, %v3891_v10  ;;  %v200_v12 = vrot.slane %v4050_v47, %v4132_v2  ;;  %v68_v14 = vrot.slane %v4079_v55, %v4086_v57  ;;  %v64_v19 = vrot.slane %v4079_v55, %v4132_v2 }
  0x19   :  { %784 = vmatprep.mubr.f32.mxu0 %v5178_v3  ;;  %873 = vmatprep.mubr.f32.mxu1 %v5178_v3  ;;  %v72_v20 = vrot.slane %v4079_v55, %v4139_v4  ;;  %v4248_v27 = vor.u32 %v3525_v24, %v3524_v23 }
  0x1a   :  { %2129 = vperm.xlu0 %3726, %v2123_v25   ;;  %2134 = vperm.xlu1 %3727, %v2124_v33   ;;  %v4238_v25 = vld [vmem:[%s5173_s3 + $0x10] sm:$0xff] }
  0x1b   :  { %v220_v35 = vrot.slane %v4248_v27, %v3982_v30  ;;  %v228_v36 = vrot.slane %v4248_v27, %v3987_v32  ;;  %v236_v51 = vrot.slane %v4248_v27, %v4086_v57  ;;  %v244_v52 = vrot.slane %v4248_v27, %v4103_v61 }
  0x1c   :  { %3572 = vmatmul.mubr.msk.f32.gmra.mxu0 %vm517_vm0, %v3908_v13  ;;  %3576 = vmatmul.mubr.msk.f32.gmra.mxu1 %vm517_vm0, %v3908_v13  ;;  %v232_v53 = vrot.slane %v4248_v27, %v4132_v2  ;;  %v240_v54 = vrot.slane %v4248_v27, %v4139_v4 }
  0x1d   :  { %790 = vmatprep.mubr.f32.mxu0 %v5178_v3  ;;  %879 = vmatprep.mubr.f32.mxu1 %v5178_v3 }
  0x1e   :  { %2139 = vperm.xlu0 %3726, %v2125_v29   ;;  %2144 = vperm.xlu1 %3727, %v2126_v37   ;;  %v3504_v29 = vld [vmem:[%s5171_s0 + $0x40] ss:$8 sm:$0xf] }
  0x20   :  { %3573 = vmatmul.mubr.msk.f32.gmra.mxu0 %vm517_vm0, %v3919_v15  ;;  %3577 = vmatmul.mubr.msk.f32.gmra.mxu1 %vm517_vm0, %v3919_v15 }
  0x21   :  { %950 = vmatprep.mubr.f32.mxu0 %v5178_v3  ;;  %1039 = vmatprep.mubr.f32.mxu1 %v5178_v3 }
  0x22   :  { %2942 = vperm.xlu0 %3726, %v2936_v34   ;;  %2947 = vperm.xlu1 %3727, %v2937_v42  }
  0x24   :  { %3578 = vmatmul.mubr.msk.f32.vlgmr.msra.gmra.mxu0 %vm517_vm0, %v3868_v5  ;;  %3582 = vmatmul.mubr.msk.f32.vlgmr.msra.gmra.mxu1 %vm517_vm0, %v3868_v5 }
  0x25   :  { %956 = vmatprep.mubr.f32.mxu0 %v5178_v3  ;;  %1045 = vmatprep.mubr.f32.mxu1 %v5178_v3 }
  0x26   :  { %1095 = vmatpush1.msra.mxu0 %v513_v38  ;;  %1184 = vmatpush1.msra.mxu1 %v515_v39  ;;  %v216_v38 = vrot.slane %v4248_v27, %v4045_v45  ;;  %v224_v39 = vrot.slane %v4248_v27, %v4048_v46 }
  0x27   :  { %3674 = vmatprep.subr.msk.mxu0 %vm382_vm1, %v3794_v40  ;;  %3680 = vmatprep.subr.msk.mxu1 %vm384_vm2, %v3794_v40  ;;  %vm387_vm1 = vcmp.eq.s32.totalorder %v3964_v26, %v344_v6  ;;  %vm250_vm2 = vcmp.eq.s32.totalorder %v3964_v26, %v204_v7 }
  0x28   :  { %3579 = vmatmul.mubr.msk.f32.gmra.mxu0 %vm517_vm0, %v3891_v10  ;;  %3583 = vmatmul.mubr.msk.f32.gmra.mxu1 %vm517_vm0, %v3891_v10 }
  0x29   :  { %962 = vmatprep.mubr.f32.mxu0 %v5178_v3  ;;  %1051 = vmatprep.mubr.f32.mxu1 %v5178_v3 }
  0x2a   :  { %2952 = vperm.xlu0 %3726, %v2938_v41   ;;  %2957 = vperm.xlu1 %3727, %v2939_v48  }
  0x2c   :  { %3580 = vmatmul.mubr.msk.f32.gmra.mxu0 %vm517_vm0, %v3908_v13  ;;  %3584 = vmatmul.mubr.msk.f32.gmra.mxu1 %vm517_vm0, %v3908_v13 }
  0x2d   :  { %968 = vmatprep.mubr.f32.mxu0 %v5178_v3  ;;  %1057 = vmatprep.mubr.f32.mxu1 %v5178_v3 }
  0x30   :  { %3581 = vmatmul.mubr.msk.f32.gmra.mxu0 %vm517_vm0, %v3919_v15  ;;  %3585 = vmatmul.mubr.msk.f32.gmra.mxu1 %vm517_vm0, %v3919_v15 }
  0x31   :  { %1128 = vmatprep.mubr.f32.mxu0 %v5178_v3  ;;  %1217 = vmatprep.mubr.f32.mxu1 %v5178_v3 }
  0x34   :  { %3586 = vmatmul.mubr.msk.f32.vlgmr.msra.gmra.mxu0 %vm517_vm0, %v3868_v5  ;;  %3590 = vmatmul.mubr.msk.f32.vlgmr.msra.gmra.mxu1 %vm517_vm0, %v3868_v5  ;;  %v336_v5 = vrot.slane %v3984_v31, %v4132_v2  ;;  %v3505_v31 = vld [vmem:[%s5171_s0 + $0x40] ss:$8 sm:$0xf0] }
  0x35   :  { %1134 = vmatprep.mubr.f32.mxu0 %v5178_v3  ;;  %1223 = vmatprep.mubr.f32.mxu1 %v5178_v3  ;;  %v4285_v37 = vor.u32 %v3505_v31, %v3504_v29 }
  0x36   :  { %3675 = vmatpush1.msk.msra.mxu0 %vm381_vm3, %v3794_v40  ;;  %3681 = vmatpush1.msk.msra.mxu1 %vm383_vm4, %v3794_v40  ;;  %vm252_vm3 = vcmp.eq.s32.totalorder %v3964_v26, %v212_v9  ;;  %vm4206_vm4 = vcmp.eq.s32.totalorder %v3964_v26, %v200_v12 }
  0x37   :  { %3676 = vmatprep.subr.msk.mxu0 %vm246_vm5, %v3794_v40  ;;  %3682 = vmatprep.subr.msk.mxu1 %vm248_vm6, %v3794_v40  ;;  %vm114_vm6 = vcmp.eq.s32.totalorder %v3964_v26, %v68_v14  ;;  %v84_v41 = vrot.slane %v4285_v37, %v3982_v30  ;;  %v92_v42 = vrot.slane %v4285_v37, %v3987_v32 }
  0x38   :  { %3587 = vmatmul.mubr.msk.f32.gmra.mxu0 %vm517_vm0, %v3891_v10  ;;  %3591 = vmatmul.mubr.msk.f32.gmra.mxu1 %vm517_vm0, %v3891_v10  ;;  %v3544_v10 = vld [vmem:[%s5171_s0 + $0x42] ss:$8 sm:$0xf]  ;;  %v80_v43 = vrot.slane %v4285_v37, %v4045_v45  ;;  %v88_v44 = vrot.slane %v4285_v37, %v4048_v46  ;;  %v108_v56 = vrot.slane %v4285_v37, %v4103_v61 }
  0x39   :  { %1140 = vmatprep.mubr.f32.mxu0 %v5178_v3  ;;  %1229 = vmatprep.mubr.f32.mxu1 %v5178_v3  ;;  %v4194_v16 = vor.u32 %v3545_v11, %v3544_v10  ;;  %v96_v58 = vrot.slane %v4285_v37, %v4132_v2  ;;  %v104_v59 = vrot.slane %v4285_v37, %v4139_v4 }
  0x3a   :  { %3677 = vmatpush1.msk.msra.mxu0 %vm245_vm7, %v3794_v40  ;;  %3683 = vmatpush1.msk.msra.mxu1 %vm247_vm8, %v3794_v40  ;;  %vm113_vm8 = vcmp.eq.s32.totalorder %v3964_v26, %v64_v19 }
  0x3b   :  { %3678 = vmatprep.subr.msk.mxu0 %vm110_vm9, %v3794_v40  ;;  %3684 = vmatprep.subr.msk.mxu1 %vm112_vm10, %v3794_v40  ;;  %v356_v21 = vrot.slane %v4194_v16, %v3982_v30  ;;  %v364_v22 = vrot.slane %v4194_v16, %v3987_v32  ;;  %vm115_vm9 = vcmp.eq.s32.totalorder %v3964_v26, %v72_v20 }
  0x3c   :  { %3588 = vmatmul.mubr.msk.f32.gmra.mxu0 %vm517_vm0, %v3908_v13  ;;  %3592 = vmatmul.mubr.msk.f32.gmra.mxu1 %vm517_vm0, %v3908_v13  ;;  %v208_v13 = vrot.slane %v4050_v47, %v4139_v4  ;;  %v352_v33 = vrot.slane %v4194_v16, %v4045_v45  ;;  %v360_v34 = vrot.slane %v4194_v16, %v4048_v46 }
  0x3d   :  { %1146 = vmatprep.mubr.f32.mxu0 %v5178_v3  ;;  %1235 = vmatprep.mubr.f32.mxu1 %v5178_v3  ;;  %vm390_vm10 = vcmp.eq.s32.totalorder %v3964_v26, %v356_v21  ;;  %v372_v47 = vrot.slane %v4194_v16, %v4086_v57  ;;  %v380_v48 = vrot.slane %v4194_v16, %v4103_v61 }
  0x3e   :  { %3679 = vmatpush1.msk.msra.mxu0 %vm109_vm11, %v3794_v40  ;;  %3685 = vmatpush1.msk.msra.mxu1 %vm111_vm12, %v3794_v40  ;;  %vm251_vm5 = vcmp.eq.s32.totalorder %v3964_v26, %v208_v13  ;;  %vm392_vm11 = vcmp.eq.s32.totalorder %v3964_v26, %v364_v22  ;;  %vm389_vm12 = vcmp.eq.s32.totalorder %v3964_v26, %v352_v33 }
  0x3f   :  { %3686 = vmatprep.subr.msk.mxu0 %vm386_vm13, %v3794_v40  ;;  %3692 = vmatprep.subr.msk.mxu1 %vm388_vm14, %v3794_v40  ;;  %vm391_vm13 = vcmp.eq.s32.totalorder %v3964_v26, %v360_v34  ;;  %vm254_vm14 = vcmp.eq.s32.totalorder %v3964_v26, %v220_v35  ;;  %v368_v49 = vrot.slane %v4194_v16, %v4132_v2 }
  0x40   :  { %3589 = vmatmul.mubr.msk.f32.gmra.mxu0 %vm517_vm0, %v3919_v15  ;;  %3593 = vmatmul.mubr.msk.f32.gmra.mxu1 %vm517_vm0, %v3919_v15  ;;  %vm385_vm0 = vcmp.eq.s32.totalorder %v3964_v26, %v336_v5  ;;  %v76_v15 = vrot.slane %v4079_v55, %v4103_v61  ;;  %v376_v50 = vrot.slane %v4194_v16, %v4139_v4 }
  0x41   :  { %1319 = vmatprep.mubr.f32.mxu0 %v5178_v3  ;;  %1408 = vmatprep.mubr.f32.mxu1 %v5178_v3  ;;  %v100_v55 = vrot.slane %v4285_v37, %v4086_v57 }
  0x42   :  { %vm116_vm7 = vcmp.eq.s32.totalorder %v3964_v26, %v76_v15 }
  0x44   :  { %3594 = vmatmul.mubr.msk.f32.vlgmr.msra.gmra.mxu0 %vm1242_vm15, %v4166_v8  ;;  %3598 = vmatmul.mubr.msk.f32.vlgmr.msra.gmra.mxu1 %vm1242_vm15, %v4166_v8 }
  0x45   :  { %1325 = vmatprep.mubr.f32.mxu0 %v5178_v3  ;;  %1414 = vmatprep.mubr.f32.mxu1 %v5178_v3 }
  0x46   :  { %3687 = vmatpush1.msk.msra.mxu0 %vm385_vm0, %v3794_v40  ;;  %3693 = vmatpush1.msk.msra.mxu1 %vm387_vm1, %v3794_v40  ;;  %vm256_vm0 = vcmp.eq.s32.totalorder %v3964_v26, %v228_v36  ;;  %vm253_vm1 = vcmp.eq.s32.totalorder %v3964_v26, %v216_v38 }
  0x47   :  { %3688 = vmatprep.subr.msk.mxu0 %vm250_vm2, %v3794_v40  ;;  %3694 = vmatprep.subr.msk.mxu1 %vm252_vm3, %v3794_v40  ;;  %vm255_vm2 = vcmp.eq.s32.totalorder %v3964_v26, %v224_v39  ;;  %vm118_vm3 = vcmp.eq.s32.totalorder %v3964_v26, %v84_v41 }
  0x48   :  { %3595 = vmatmul.mubr.msk.f32.gmra.mxu0 %vm1242_vm15, %v4201_v17  ;;  %3599 = vmatmul.mubr.msk.f32.gmra.mxu1 %vm1242_vm15, %v4201_v17 }
  0x49   :  { %1331 = vmatprep.mubr.f32.mxu0 %v5178_v3  ;;  %1420 = vmatprep.mubr.f32.mxu1 %v5178_v3 }
  0x4a   :  { %3689 = vmatpush1.msk.msra.mxu0 %vm4206_vm4, %v3794_v40  ;;  %3695 = vmatpush1.msk.msra.mxu1 %vm251_vm5, %v3794_v40  ;;  %vm120_vm4 = vcmp.eq.s32.totalorder %v3964_v26, %v92_v42  ;;  %vm117_vm5 = vcmp.eq.s32.totalorder %v3964_v26, %v80_v43 }
  0x4b   :  { %3690 = vmatprep.subr.msk.mxu0 %vm114_vm6, %v3794_v40  ;;  %3696 = vmatprep.subr.msk.mxu1 %vm116_vm7, %v3794_v40  ;;  %vm119_vm6 = vcmp.eq.s32.totalorder %v3964_v26, %v88_v44  ;;  %vm394_vm7 = vcmp.eq.s32.totalorder %v3964_v26, %v372_v47 }
  0x4c   :  { %3596 = vmatmul.mubr.msk.f32.gmra.mxu0 %vm1242_vm15, %v4238_v25  ;;  %3600 = vmatmul.mubr.msk.f32.gmra.mxu1 %vm1242_vm15, %v4238_v25 }
  0x4d   :  { %1337 = vmatprep.mubr.f32.mxu0 %v5178_v3  ;;  %1426 = vmatprep.mubr.f32.mxu1 %v5178_v3 }
  0x4e   :  { %3691 = vmatpush1.msk.msra.mxu0 %vm113_vm8, %v3794_v40  ;;  %3697 = vmatpush1.msk.msra.mxu1 %vm115_vm9, %v3794_v40  ;;  %vm396_vm8 = vcmp.eq.s32.totalorder %v3964_v26, %v380_v48  ;;  %vm393_vm9 = vcmp.eq.s32.totalorder %v3964_v26, %v368_v49 }
  0x4f   :  { %3698 = vmatprep.subr.msk.mxu0 %vm390_vm10, %v3794_v40  ;;  %3704 = vmatprep.subr.msk.mxu1 %vm392_vm11, %v3794_v40  ;;  %vm395_vm10 = vcmp.eq.s32.totalorder %v3964_v26, %v376_v50  ;;  %vm258_vm11 = vcmp.eq.s32.totalorder %v3964_v26, %v236_v51 }
  0x50   :  { %3597 = vmatmul.mubr.msk.f32.gmra.mxu0 %vm1242_vm15, %v4257_v28  ;;  %3601 = vmatmul.mubr.msk.f32.gmra.mxu1 %vm1242_vm15, %v4257_v28 }
  0x51   :  { %1497 = vmatprep.mubr.f32.mxu0 %v5178_v3  ;;  %1586 = vmatprep.mubr.f32.mxu1 %v5178_v3 }
  0x54   :  { %3602 = vmatmul.mubr.msk.f32.vlgmr.msra.gmra.mxu0 %vm1242_vm15, %v4166_v8  ;;  %3606 = vmatmul.mubr.msk.f32.vlgmr.msra.gmra.mxu1 %vm1242_vm15, %v4166_v8 }
  0x55   :  { %1503 = vmatprep.mubr.f32.mxu0 %v5178_v3  ;;  %1592 = vmatprep.mubr.f32.mxu1 %v5178_v3 }
  0x56   :  { %3699 = vmatpush1.msk.msra.mxu0 %vm389_vm12, %v3794_v40  ;;  %3705 = vmatpush1.msk.msra.mxu1 %vm391_vm13, %v3794_v40  ;;  %vm260_vm12 = vcmp.eq.s32.totalorder %v3964_v26, %v244_v52  ;;  %vm257_vm13 = vcmp.eq.s32.totalorder %v3964_v26, %v232_v53 }
  0x57   :  { %3700 = vmatprep.subr.msk.mxu0 %vm254_vm14, %v3794_v40  ;;  %3706 = vmatprep.subr.msk.mxu1 %vm256_vm0, %v3794_v40  ;;  %vm259_vm14 = vcmp.eq.s32.totalorder %v3964_v26, %v240_v54  ;;  %vm122_vm0 = vcmp.eq.s32.totalorder %v3964_v26, %v100_v55 }
  0x58   :  { %3603 = vmatmul.mubr.msk.f32.gmra.mxu0 %vm1242_vm15, %v4201_v17  ;;  %3607 = vmatmul.mubr.msk.f32.gmra.mxu1 %vm1242_vm15, %v4201_v17 }
  0x59   :  { %1509 = vmatprep.mubr.f32.mxu0 %v5178_v3  ;;  %1598 = vmatprep.mubr.f32.mxu1 %v5178_v3 }
  0x5a   :  { %3701 = vmatpush1.msk.msra.mxu0 %vm253_vm1, %v3794_v40  ;;  %3707 = vmatpush1.msk.msra.mxu1 %vm255_vm2, %v3794_v40  ;;  %vm124_vm1 = vcmp.eq.s32.totalorder %v3964_v26, %v108_v56  ;;  %vm121_vm2 = vcmp.eq.s32.totalorder %v3964_v26, %v96_v58 }
  0x5b   :  { %3702 = vmatprep.subr.msk.mxu0 %vm118_vm3, %v3794_v40  ;;  %3708 = vmatprep.subr.msk.mxu1 %vm120_vm4, %v3794_v40  ;;  %vm123_vm3 = vcmp.eq.s32.totalorder %v3964_v26, %v104_v59 }
  0x5c   :  { %3604 = vmatmul.mubr.msk.f32.gmra.mxu0 %vm1242_vm15, %v4238_v25  ;;  %3608 = vmatmul.mubr.msk.f32.gmra.mxu1 %vm1242_vm15, %v4238_v25 }
  0x5d   :  { %1515 = vmatprep.mubr.f32.mxu0 %v5178_v3  ;;  %1604 = vmatprep.mubr.f32.mxu1 %v5178_v3 }
  0x5e   :  { %3703 = vmatpush1.msk.msra.mxu0 %vm117_vm5, %v3794_v40  ;;  %3709 = vmatpush1.msk.msra.mxu1 %vm119_vm6, %v3794_v40 }
  0x5f   :  { %3710 = vmatprep.subr.msk.mxu0 %vm394_vm7, %v3794_v40  ;;  %3716 = vmatprep.subr.msk.mxu1 %vm396_vm8, %v3794_v40 }
  0x60   :  { %3605 = vmatmul.mubr.msk.f32.gmra.mxu0 %vm1242_vm15, %v4257_v28  ;;  %3609 = vmatmul.mubr.msk.f32.gmra.mxu1 %vm1242_vm15, %v4257_v28 }
  0x61   :  { %1675 = vmatprep.mubr.f32.mxu0 %v5178_v3  ;;  %1764 = vmatprep.mubr.f32.mxu1 %v5178_v3 }
  0x64   :  { %3610 = vmatmul.mubr.msk.f32.vlgmr.msra.gmra.mxu0 %vm1242_vm15, %v4166_v8  ;;  %3614 = vmatmul.mubr.msk.f32.vlgmr.msra.gmra.mxu1 %vm1242_vm15, %v4166_v8 }
  0x65   :  { %1681 = vmatprep.mubr.f32.mxu0 %v5178_v3  ;;  %1770 = vmatprep.mubr.f32.mxu1 %v5178_v3 }
  0x66   :  { %3711 = vmatpush1.msk.msra.mxu0 %vm393_vm9, %v3794_v40  ;;  %3717 = vmatpush1.msk.msra.mxu1 %vm395_vm10, %v3794_v40 }
  0x67   :  { %3712 = vmatprep.subr.msk.mxu0 %vm258_vm11, %v3794_v40  ;;  %3718 = vmatprep.subr.msk.mxu1 %vm260_vm12, %v3794_v40 }
  0x68   :  { %3611 = vmatmul.mubr.msk.f32.gmra.mxu0 %vm1242_vm15, %v4201_v17  ;;  %3615 = vmatmul.mubr.msk.f32.gmra.mxu1 %vm1242_vm15, %v4201_v17 }
  0x69   :  { %1687 = vmatprep.mubr.f32.mxu0 %v5178_v3  ;;  %1776 = vmatprep.mubr.f32.mxu1 %v5178_v3 }
  0x6a   :  { %3713 = vmatpush1.msk.msra.mxu0 %vm257_vm13, %v3794_v40  ;;  %3719 = vmatpush1.msk.msra.mxu1 %vm259_vm14, %v3794_v40 }
  0x6b   :  { %3714 = vmatprep.subr.msk.mxu0 %vm122_vm0, %v3794_v40  ;;  %3720 = vmatprep.subr.msk.mxu1 %vm124_vm1, %v3794_v40 }
  0x6c   :  { %3612 = vmatmul.mubr.msk.f32.gmra.mxu0 %vm1242_vm15, %v4238_v25  ;;  %3616 = vmatmul.mubr.msk.f32.gmra.mxu1 %vm1242_vm15, %v4238_v25 }
  0x6d   :  { %1693 = vmatprep.mubr.f32.mxu0 %v5178_v3  ;;  %1782 = vmatprep.mubr.f32.mxu1 %v5178_v3 }
  0x6e   :  { %3715 = vmatpush1.msk.msra.mxu0 %vm121_vm2, %v3794_v40  ;;  %3721 = vmatpush1.msk.msra.mxu1 %vm123_vm3, %v3794_v40 }
  0x70   :  { %3613 = vmatmul.mubr.msk.f32.gmra.mxu0 %vm1242_vm15, %v4257_v28  ;;  %3617 = vmatmul.mubr.msk.f32.gmra.mxu1 %vm1242_vm15, %v4257_v28 }
  0x71   :  { %1853 = vmatprep.mubr.f32.mxu0 %v5178_v3  ;;  %1942 = vmatprep.mubr.f32.mxu1 %v5178_v3 }
  0x74   :  { %3618 = vmatmul.mubr.msk.f32.vlgmr.msra.gmra.mxu0 %vm1242_vm15, %v4166_v8  ;;  %3622 = vmatmul.mubr.msk.f32.vlgmr.msra.gmra.mxu1 %vm1242_vm15, %v4166_v8 }
  0x75   :  { %1859 = vmatprep.mubr.f32.mxu0 %v5178_v3  ;;  %1948 = vmatprep.mubr.f32.mxu1 %v5178_v3 }
  0x78   :  { %3619 = vmatmul.mubr.msk.f32.gmra.mxu0 %vm1242_vm15, %v4201_v17  ;;  %3623 = vmatmul.mubr.msk.f32.gmra.mxu1 %vm1242_vm15, %v4201_v17 }
  0x79   :  { %1865 = vmatprep.mubr.f32.mxu0 %v5178_v3  ;;  %1954 = vmatprep.mubr.f32.mxu1 %v5178_v3 }
  0x7c   :  { %3620 = vmatmul.mubr.msk.f32.gmra.mxu0 %vm1242_vm15, %v4238_v25  ;;  %3624 = vmatmul.mubr.msk.f32.gmra.mxu1 %vm1242_vm15, %v4238_v25 }
  0x7d   :  { %1871 = vmatprep.mubr.f32.mxu0 %v5178_v3  ;;  %1960 = vmatprep.mubr.f32.mxu1 %v5178_v3 }
  0x80   :  { %3621 = vmatmul.mubr.msk.f32.gmra.mxu0 %vm1242_vm15, %v4257_v28  ;;  %3625 = vmatmul.mubr.msk.f32.gmra.mxu1 %vm1242_vm15, %v4257_v28  ;;  %vm2147_vm15 = vcmask 261120  }
  0x81   :  { %2224 = vmatprep.mubr.f32.mxu0 %v5178_v3  ;;  %2313 = vmatprep.mubr.f32.mxu1 %v5178_v3 }
  0xc4   :  { %v4441_v40 = vpop.f32.mrf.mxu0  ;;  %v4443_v60 = vpop.f32.mrf.mxu1 }
  0xc6   :  { %v4445_v62 = vpop.f32.mrf.mxu0  ;;  %v4447_v63 = vpop.f32.mrf.mxu1 }
  0xc8   :  { %v4449_v0 = vpop.f32.mrf.mxu0  ;;  %v4451_v1 = vpop.f32.mrf.mxu1 }
  0xca   :  { %v4453_v5 = vpop.f32.mrf.mxu0  ;;  %v4455_v6 = vpop.f32.mrf.mxu1 }
  0xcc   :  { %v4457_v7 = vpop.f32.mrf.mxu0  ;;  %v4459_v8 = vpop.f32.mrf.mxu1 }
  0xce   :  { %v4461_v9 = vpop.f32.mrf.mxu0  ;;  %v4463_v10 = vpop.f32.mrf.mxu1 }
  0xd0   :  { %v4465_v11 = vpop.f32.mrf.mxu0  ;;  %v4467_v12 = vpop.f32.mrf.mxu1 }
  0xd2   :  { %v4469_v13 = vpop.f32.mrf.mxu0  ;;  %v4471_v14 = vpop.f32.mrf.mxu1 }
  0xd4   :  { %v4473_v15 = vpop.f32.mrf.mxu0  ;;  %v4475_v16 = vpop.f32.mrf.mxu1 }
  0xd6   :  { %v4477_v17 = vpop.f32.mrf.mxu0  ;;  %v4479_v18 = vpop.f32.mrf.mxu1 }
  0xd8   :  { %v4481_v19 = vpop.f32.mrf.mxu0  ;;  %v4483_v20 = vpop.f32.mrf.mxu1 }
  0xda   :  { %v4485_v21 = vpop.f32.mrf.mxu0  ;;  %v4487_v22 = vpop.f32.mrf.mxu1 }
  0xdc   :  { %v4489_v23 = vpop.f32.mrf.mxu0  ;;  %v4491_v24 = vpop.f32.mrf.mxu1 }
  0xde   :  { %v4493_v25 = vpop.f32.mrf.mxu0  ;;  %v4495_v27 = vpop.f32.mrf.mxu1 }
  0xe0   :  { %v4497_v28 = vpop.f32.mrf.mxu0  ;;  %v4499_v29 = vpop.f32.mrf.mxu1 }
  0xe2   :  { %v4501_v31 = vpop.f32.mrf.mxu0  ;;  %v4503_v33 = vpop.f32.mrf.mxu1 }
  0xe4   :  { %v4505_v34 = vpop.f32.mrf.mxu0  ;;  %v4507_v35 = vpop.f32.mrf.mxu1 }
  0xe5   :  { %5208 = vst [vmem:[#allocation13_spill] sm:$0xff] %v4505_v34  ;;  %5209 = vst [vmem:[#allocation14_spill] sm:$0xff] %v4507_v35 }
  0xe6   :  { %v4509_v36 = vpop.f32.mrf.mxu0  ;;  %v4511_v37 = vpop.f32.mrf.mxu1 }
  0xe7   :  { %5210 = vst [vmem:[#allocation15_spill] sm:$0xff] %v4509_v36  ;;  %5211 = vst [vmem:[#allocation16_spill] sm:$0xff] %v4511_v37 }
  0xe8   :  { %v4513_v38 = vpop.f32.mrf.mxu0  ;;  %v4515_v39 = vpop.f32.mrf.mxu1 }
  0xe9   :  { %5212 = vst [vmem:[#allocation17_spill] sm:$0xff] %v4513_v38  ;;  %5213 = vst [vmem:[#allocation18_spill] sm:$0xff] %v4515_v39  ;;  %v4571_v39 = vpop.permute.xlu1 %1978 }
  0xea   :  { %v4517_v41 = vpop.f32.mrf.mxu0  ;;  %v4519_v42 = vpop.f32.mrf.mxu1 }
  0xeb   :  { %5214 = vst [vmem:[#allocation19_spill] sm:$0xff] %v4517_v41  ;;  %5215 = vst [vmem:[#allocation20_spill] sm:$0xff] %v4519_v42 }
  0xec   :  { %v4521_v43 = vpop.f32.mrf.mxu0  ;;  %v4523_v44 = vpop.f32.mrf.mxu1 }
  0xed   :  { %5216 = vst [vmem:[#allocation21_spill] sm:$0xff] %v4521_v43  ;;  %5217 = vst [vmem:[#allocation22_spill] sm:$0xff] %v4523_v44 }
  0xee   :  { %v4525_v47 = vpop.f32.mrf.mxu0  ;;  %v4527_v48 = vpop.f32.mrf.mxu1 }
  0xef   :  { %5218 = vst [vmem:[#allocation23_spill] sm:$0xff] %v4527_v48 }
  0xf0   :  { %v4529_v49 = vpop.f32.mrf.mxu0  ;;  %v4531_v50 = vpop.f32.mrf.mxu1 }
  0xf2   :  { %v4533_v51 = vpop.f32.mrf.mxu0  ;;  %v4535_v52 = vpop.f32.mrf.mxu1 }
  0xf4   :  { %v4537_v53 = vpop.f32.mrf.mxu0  ;;  %v4539_v54 = vpop.f32.mrf.mxu1 }
  0xf5   :  { %5219 = vst [vmem:[#allocation24_spill] sm:$0xff] %v4537_v53  ;;  %5220 = vst [vmem:[#allocation25_spill] sm:$0xff] %v4539_v54 }
  0xf6   :  { %v4541_v55 = vpop.f32.mrf.mxu0  ;;  %v4543_v56 = vpop.f32.mrf.mxu1 }
  0xf7   :  { %5221 = vst [vmem:[#allocation26_spill] sm:$0xff] %v4541_v55  ;;  %5222 = vst [vmem:[#allocation27_spill] sm:$0xff] %v4543_v56 }
  0xf8   :  { %v4545_v58 = vpop.f32.mrf.mxu0  ;;  %v4547_v59 = vpop.f32.mrf.mxu1 }
  0xf9   :  { %5223 = vst [vmem:[#allocation28_spill] sm:$0xff] %v4545_v58  ;;  %5224 = vst [vmem:[#allocation29_spill] sm:$0xff] %v4547_v59 }
  0xfa   :  { %v4549_v3 = vpop.f32.mrf.mxu0  ;;  %v4551_v26 = vpop.f32.mrf.mxu1 }
  0xfb   :  { %5225 = vst [vmem:[#allocation30_spill] sm:$0xff] %v4549_v3  ;;  %5226 = vst [vmem:[#allocation31_spill] sm:$0xff] %v4551_v26 }
  0xfc   :  { %v4553_v61 = vpop.f32.mrf.mxu0  ;;  %v4555_v57 = vpop.f32.mrf.mxu1 }
  0xfd   :  { %5227 = vst [vmem:[#allocation32_spill] sm:$0xff] %v4553_v61  ;;  %5228 = vst [vmem:[#allocation33_spill] sm:$0xff] %v4555_v57  ;;  %v4569_v61 = vpop.permute.xlu0 %1988 }
  0xfe   :  { %v4557_v4 = vpop.f32.mrf.mxu0  ;;  %v4559_v2 = vpop.f32.mrf.mxu1 }
  0xff   :  { %5229 = vst [vmem:[#allocation34_spill] sm:$0xff] %v4557_v4  ;;  %5230 = vst [vmem:[#allocation35_spill] sm:$0xff] %v4559_v2 }
 0x100   :  { %v4561_v32 = vpop.f32.mrf.mxu0  ;;  %v4563_v30 = vpop.f32.mrf.mxu1 }
 0x101   :  { %5231 = vst [vmem:[#allocation36_spill] sm:$0xff] %v4561_v32  ;;  %5232 = vst [vmem:[#allocation37_spill] sm:$0xff] %v4563_v30  ;;  %v4580_v48 = vpop.permute.xlu0 %1983 }
 0x102   :  { %v4565_v46 = vpop.f32.mrf.mxu0  ;;  %v4567_v45 = vpop.f32.mrf.mxu1 }
 0x103   :  { %5233 = vst [vmem:[#allocation38_spill] sm:$0xff] %v4565_v46  ;;  %5234 = vst [vmem:[#allocation39_spill] sm:$0xff] %v4567_v45 }
 0x104   :  { %v1321_v56 = vpop.f32.mrf.mxu0  ;;  %v1410_v54 = vpop.f32.mrf.mxu1 }
 0x105   :  { %v1322_v45 = vadd.f32 %v1321_v56, %v4441_v40 }
 0x106   :  { %v1323_v55 = vpop.f32.mrf.mxu0  ;;  %v1412_v53 = vpop.f32.mrf.mxu1 }
 0x107   :  { %v1324_v46 = vadd.f32 %v1323_v55, %v4445_v62 }
 0x108   :  { %v1327_v59 = vpop.f32.mrf.mxu0  ;;  %v1416_v26 = vpop.f32.mrf.mxu1 }
 0x10a   :  { %v1329_v3 = vpop.f32.mrf.mxu0  ;;  %v1418_v58 = vpop.f32.mrf.mxu1 }
 0x10b   :  { %v1330_v41 = vadd.f32 %v1329_v3, %v4453_v5  ;;  %v1417_v3 = vadd.f32 %v1416_v26, %v4451_v1 }
 0x10c   :  { %v1333_v57 = vpop.f32.mrf.mxu0  ;;  %v1422_v4 = vpop.f32.mrf.mxu1 }
 0x10d   :  { %v1334_v42 = vadd.f32 %v1333_v57, %v4457_v7  ;;  %v1423_v40 = vadd.f32 %v1422_v4, %v4459_v8  ;;  %v1328_v57 = vadd.f32 %v1327_v59, %v4449_v0  ;;  %v1411_v0 = vadd.f32 %v1410_v54, %v4443_v60 }
 0x10e   :  { %v1335_v2 = vpop.f32.mrf.mxu0  ;;  %v1424_v32 = vpop.f32.mrf.mxu1  ;;  %v2008_v26 = vadd.f32 %v4571_v39, %v1330_v41 }
 0x10f   :  { %v1336_v37 = vadd.f32 %v1335_v2, %v4461_v9  ;;  %v1425_v38 = vadd.f32 %v1424_v32, %v4463_v10  ;;  %v1419_v32 = vadd.f32 %v1418_v58, %v4455_v6  ;;  %v1413_v6 = vadd.f32 %v1412_v53, %v4447_v63 }
 0x110   :  { %v1339_v35 = vpop.f32.mrf.mxu0  ;;  %v1428_v30 = vpop.f32.mrf.mxu1  ;;  %v2025_v1 = vadd.f32 %v4580_v48, %v1423_v40  ;;  %v2007_v60 = vadd.f32 %v4571_v39, %v1328_v57  ;;  %v2009_v53 = vadd.f32 %v4571_v39, %v1417_v3 }
 0x111   :  { %v1340_v36 = vadd.f32 %v1339_v35, %v4465_v11  ;;  %v1429_v34 = vadd.f32 %v1428_v30, %v4467_v12  ;;  %v2024_v4 = vadd.f32 %v4580_v48, %v1336_v37  ;;  %v2023_v11 = vadd.f32 %v4580_v48, %v1334_v42 }
 0x112   :  { %v1341_v44 = vpop.f32.mrf.mxu0  ;;  %v1430_v43 = vpop.f32.mrf.mxu1  ;;  %v2026_v12 = vadd.f32 %v4580_v48, %v1425_v38  ;;  %v2010_v63 = vadd.f32 %v4571_v39, %v1419_v32  ;;  %v2071_v57 = vmax.f32 %v2007_v60, 0.0 }
 0x113   :  { %v1342_v62 = vadd.f32 %v1341_v44, %v4469_v13  ;;  %v1431_v2 = vadd.f32 %v1430_v43, %v4471_v14  ;;  %v2039_v7 = vadd.f32 %v4569_v61, %v1340_v36  ;;  %v2041_v30 = vadd.f32 %v4569_v61, %v1429_v34  ;;  %v4606_v34 = vpop.permute.xlu1 %1973 }
 0x114   :  { %v4590_v9 = vpop.f32.mrf.mxu0  ;;  %v4592_v10 = vpop.f32.mrf.mxu1  ;;  %v1992_v44 = vadd.f32 %v4606_v34, %v1324_v46  ;;  %v2088_v54 = vmax.f32 %v2024_v4, 0.0  ;;  %v1994_v41 = vadd.f32 %v4606_v34, %v1413_v6  ;;  %v2087_v55 = vmax.f32 %v2023_v11, 0.0 }
 0x115   :  { %v2040_v5 = vadd.f32 %v4569_v61, %v1342_v62  ;;  %v2042_v8 = vadd.f32 %v4569_v61, %v1431_v2  ;;  %v2103_v37 = vmax.f32 %v2039_v7, 0.0  ;;  %v2105_v42 = vmax.f32 %v2041_v30, 0.0 }
 0x116   :  { %v4602_v13 = vpop.f32.mrf.mxu0  ;;  %v4604_v14 = vpop.f32.mrf.mxu1  ;;  %v2090_v56 = vmax.f32 %v2026_v12, 0.0  ;;  %v1991_v40 = vadd.f32 %v4606_v34, %v1322_v45  ;;  %v2072_v62 = vmax.f32 %v2008_v26, 0.0  ;;  %v2089_v2 = vmax.f32 %v2025_v1, 0.0 }
 0x117   :  { %v2104_v35 = vmax.f32 %v2040_v5, 0.0  ;;  %v2106_v36 = vmax.f32 %v2042_v8, 0.0  ;;  %v1993_v46 = vadd.f32 %v4606_v34, %v1411_v0  ;;  %v2074_v32 = vmax.f32 %v2010_v63, 0.0  ;;  %v4624_v0 = vld [vmem:[%s5174_s6] sm:$0xff] }
 0x118   :  { %v4612_v43 = vpop.f32.mrf.mxu0  ;;  %v4614_v38 = vpop.f32.mrf.mxu1  ;;  %v2056_v3 = vmax.f32 %v1992_v44, 0.0  ;;  %v2073_v4 = vmax.f32 %v2009_v53, 0.0  ;;  %v2058_v5 = vmax.f32 %v1994_v41, 0.0  ;;  %v2055_v45 = vmax.f32 %v1991_v40, 0.0 }
 0x119   :  { %2184 = vmatprep.subr.mxu0 %v2104_v35  ;;  %2273 = vmatprep.subr.mxu1 %v2106_v36  ;;  %v2057_v11 = vmax.f32 %v1993_v46, 0.0  ;;  %v4669_v46 = vld [vmem:[%s5174_s6 + $0x10] sm:$0xff] }
 0x11a   :  { %v1507_v58 = vpop.f32.mrf.mxu0  ;;  %v1596_v59 = vpop.f32.mrf.mxu1  ;;  %2185 = vmatpush1.msra.mxu0 %v2103_v37  ;;  %2274 = vmatpush1.msra.mxu1 %v2105_v42  ;;  %v5235_v42 = vmov 0.0  }
 0x11b   :  { %2186 = vmatprep.subr.mxu0 %v2088_v54  ;;  %2275 = vmatprep.subr.mxu1 %v2090_v56 }
 0x11c   :  { %v1511_v7 = vpop.f32.mrf.mxu0  ;;  %v1600_v30 = vpop.f32.mrf.mxu1  ;;  %2187 = vmatpush1.msra.mxu0 %v2087_v55  ;;  %2276 = vmatpush1.msra.mxu1 %v2089_v2 }
 0x11d   :  { %2188 = vmatprep.subr.mxu0 %v2072_v62  ;;  %2277 = vmatprep.subr.mxu1 %v2074_v32  ;;  %v1595_v32 = vadd.f32 %v4614_v38, %v4483_v20  ;;  %v1500_v20 = vadd.f32 %v4590_v9, %v4473_v15 }
 0x11e   :  { %v1513_v8 = vpop.f32.mrf.mxu0  ;;  %v1602_v6 = vpop.f32.mrf.mxu1  ;;  %2189 = vmatpush1.msra.mxu0 %v2071_v57  ;;  %2278 = vmatpush1.msra.mxu1 %v2073_v4  ;;  %v1506_v57 = vadd.f32 %v4612_v43, %v4481_v19  ;;  %v1589_v43 = vadd.f32 %v4592_v10, %v4475_v16 }
 0x11f   :  { %2190 = vmatprep.subr.mxu0 %v2056_v3  ;;  %2279 = vmatprep.subr.mxu1 %v2058_v5  ;;  %v1514_v63 = vadd.f32 %v1513_v8, %v4493_v25  ;;  %v1603_v37 = vadd.f32 %v1602_v6, %v4495_v27  ;;  %v1512_v25 = vadd.f32 %v1511_v7, %v4489_v23 }
 0x120   :  { %v1517_v12 = vpop.f32.mrf.mxu0  ;;  %v1606_v26 = vpop.f32.mrf.mxu1  ;;  %2191 = vmatpush1.msra.mxu0 %v2055_v45  ;;  %2280 = vmatpush1.msra.mxu1 %v2057_v11  ;;  %v1601_v27 = vadd.f32 %v1600_v30, %v4491_v24  ;;  %v1508_v23 = vadd.f32 %v1507_v58, %v4485_v21  ;;  %v1597_v24 = vadd.f32 %v1596_v59, %v4487_v22 }
 0x121   :  { %v1518_v1 = vadd.f32 %v1517_v12, %v4497_v28  ;;  %v1607_v35 = vadd.f32 %v1606_v26, %v4499_v29  ;;  %3626 = vmatmul.mubr.msk.f32.vlgmr.msra.gmra.mxu0 %vm2147_vm15, %v4624_v0  ;;  %3630 = vmatmul.mubr.msk.f32.vlgmr.msra.gmra.mxu1 %vm2147_vm15, %v4624_v0  ;;  %v4639_v28 = vld [vmem:[%s5174_s6 + $0x8] sm:$0xff]  ;;  %v2028_v62 = vadd.f32 %v4580_v48, %v1514_v63  ;;  %v4705_v26 = vld [vmem:[%s5174_s6 + $0x18] sm:$0xff] }
 0x122   :  { %v1519_v36 = vpop.f32.mrf.mxu0  ;;  %v1608_v60 = vpop.f32.mrf.mxu1  ;;  %2230 = vmatprep.mubr.f32.mxu0 %v5235_v42  ;;  %2319 = vmatprep.mubr.f32.mxu1 %v5235_v42  ;;  %v2030_v2 = vadd.f32 %v4580_v48, %v1603_v37  ;;  %v1502_v7 = vadd.f32 %v4602_v13, %v4477_v17  ;;  %v1591_v30 = vadd.f32 %v4604_v14, %v4479_v18 }
 0x123   :  { %v1520_v29 = vadd.f32 %v1519_v36, %v4501_v31  ;;  %v1609_v44 = vadd.f32 %v1608_v60, %v4503_v33  ;;  %v2043_v41 = vadd.f32 %v4569_v61, %v1518_v1  ;;  %v2045_v55 = vadd.f32 %v4569_v61, %v1607_v35 }
 0x124   :  { %v4643_v53 = vpop.f32.mrf.mxu0  ;;  %v4645_v54 = vpop.f32.mrf.mxu1  ;;  %v2027_v3 = vadd.f32 %v4580_v48, %v1512_v25  ;;  %v2029_v19 = vadd.f32 %v4580_v48, %v1601_v27  ;;  %v2012_v13 = vadd.f32 %v4571_v39, %v1508_v23  ;;  %v2014_v14 = vadd.f32 %v4571_v39, %v1597_v24 }
 0x125   :  { %v2044_v56 = vadd.f32 %v4569_v61, %v1520_v29  ;;  %v2046_v40 = vadd.f32 %v4569_v61, %v1609_v44  ;;  %3627 = vmatmul.mubr.msk.f32.gmra.mxu0 %vm2147_vm15, %v4639_v28  ;;  %3631 = vmatmul.mubr.msk.f32.gmra.mxu1 %vm2147_vm15, %v4639_v28  ;;  %v2107_v38 = vmax.f32 %v2043_v41, 0.0  ;;  %v2109_v4 = vmax.f32 %v2045_v55, 0.0 }
 0x126   :  { %v4657_v31 = vpop.f32.mrf.mxu0  ;;  %v4659_v33 = vpop.f32.mrf.mxu1  ;;  %2236 = vmatprep.mubr.f32.mxu0 %v5235_v42  ;;  %2325 = vmatprep.mubr.f32.mxu1 %v5235_v42  ;;  %v2092_v5 = vmax.f32 %v2028_v62, 0.0  ;;  %v2094_v15 = vmax.f32 %v2030_v2, 0.0  ;;  %v2011_v16 = vadd.f32 %v4571_v39, %v1506_v57  ;;  %v2013_v9 = vadd.f32 %v4571_v39, %v1595_v32 }
 0x127   :  { %v2108_v21 = vmax.f32 %v2044_v56, 0.0  ;;  %v2110_v58 = vmax.f32 %v2046_v40, 0.0  ;;  %v1996_v6 = vadd.f32 %v4606_v34, %v1502_v7  ;;  %v1998_v45 = vadd.f32 %v4606_v34, %v1591_v30 }
 0x128   :  { %v4675_v22 = vpop.f32.mrf.mxu0  ;;  %v4677_v59 = vpop.f32.mrf.mxu1  ;;  %v2091_v11 = vmax.f32 %v2027_v3, 0.0  ;;  %v2093_v12 = vmax.f32 %v2029_v19, 0.0  ;;  %v1995_v1 = vadd.f32 %v4606_v34, %v1500_v20  ;;  %v1997_v60 = vadd.f32 %v4606_v34, %v1589_v43  ;;  %v5237_v3 = vld [vmem:[#allocation23_spill] sm:$0xff] }
 0x129   :  { %3628 = vmatmul.mubr.msk.f32.gmra.mxu0 %vm2147_vm15, %v4669_v46  ;;  %3632 = vmatmul.mubr.msk.f32.gmra.mxu1 %vm2147_vm15, %v4669_v46  ;;  %v2076_v63 = vmax.f32 %v2012_v13, 0.0  ;;  %v2078_v37 = vmax.f32 %v2014_v14, 0.0  ;;  %v2075_v29 = vmax.f32 %v2011_v16, 0.0  ;;  %v2077_v44 = vmax.f32 %v2013_v9, 0.0 }
 0x12a   :  { %v1685_v17 = vpop.f32.mrf.mxu0  ;;  %v4694_v18 = vpop.f32.mrf.mxu1  ;;  %2362 = vmatprep.subr.mxu0 %v2108_v21  ;;  %2451 = vmatprep.subr.mxu1 %v2110_v58  ;;  %v2060_v41 = vmax.f32 %v1996_v6, 0.0  ;;  %v2062_v55 = vmax.f32 %v1998_v45, 0.0  ;;  %v2059_v56 = vmax.f32 %v1995_v1, 0.0  ;;  %v2061_v62 = vmax.f32 %v1997_v60, 0.0  ;;  %v5241_v45 = vld [vmem:[#allocation15_spill] sm:$0xff]  ;;  %v5243_v1 = vld [vmem:[#allocation20_spill] sm:$0xff] }
 0x12b   :  { %2363 = vmatpush1.msra.mxu0 %v2107_v38  ;;  %2452 = vmatpush1.msra.mxu1 %v2109_v4  ;;  %v5239_v4 = vld [vmem:[#allocation22_spill] sm:$0xff]  ;;  %v5244_v60 = vld [vmem:[#allocation16_spill] sm:$0xff] }
 0x12c   :  { %v1689_v10 = vpop.f32.mrf.mxu0  ;;  %v1778_v8 = vpop.f32.mrf.mxu1  ;;  %2364 = vmatprep.subr.mxu0 %v2092_v5  ;;  %2453 = vmatprep.subr.mxu1 %v2094_v15  ;;  %v5240_v15 = vld [vmem:[#allocation13_spill] sm:$0xff] }
 0x12d   :  { %2242 = vmatprep.mubr.f32.mxu0 %v5235_v42  ;;  %2331 = vmatprep.mubr.f32.mxu1 %v5235_v42  ;;  %v1678_v16 = vadd.f32 %v4643_v53, %v5240_v15  ;;  %v1769_v53 = vadd.f32 %v4659_v33, %v5244_v60  ;;  %v5252_v60 = vld [vmem:[#allocation39_spill] sm:$0xff] }
 0x12e   :  { %v1691_v35 = vpop.f32.mrf.mxu0  ;;  %v1780_v36 = vpop.f32.mrf.mxu1  ;;  %2365 = vmatpush1.msra.mxu0 %v2091_v11  ;;  %2454 = vmatpush1.msra.mxu1 %v2093_v12  ;;  %v5242_v11 = vld [vmem:[#allocation17_spill] sm:$0xff] }
 0x12f   :  { %3629 = vmatmul.mubr.msk.f32.gmra.mxu0 %vm2147_vm15, %v4705_v26  ;;  %3633 = vmatmul.mubr.msk.f32.gmra.mxu1 %vm2147_vm15, %v4705_v26  ;;  %v1692_v2 = vadd.f32 %v1691_v35, %v4525_v47  ;;  %v1781_v19 = vadd.f32 %v1780_v36, %v5237_v3  ;;  %v1684_v12 = vadd.f32 %v4675_v22, %v5242_v11 }
 0x130   :  { %v1695_v25 = vpop.f32.mrf.mxu0  ;;  %v1784_v27 = vpop.f32.mrf.mxu1  ;;  %2366 = vmatprep.subr.mxu0 %v2076_v63  ;;  %2455 = vmatprep.subr.mxu1 %v2078_v37  ;;  %v1775_v35 = vadd.f32 %v4694_v18, %v5243_v1  ;;  %v5245_v63 = vld [vmem:[#allocation18_spill] sm:$0xff] }
 0x131   :  { %2367 = vmatpush1.msra.mxu0 %v2075_v29  ;;  %2456 = vmatpush1.msra.mxu1 %v2077_v44  ;;  %v1696_v40 = vadd.f32 %v1695_v25, %v4529_v49  ;;  %v1785_v57 = vadd.f32 %v1784_v27, %v4531_v50  ;;  %v5236_v49 = vld [vmem:[#allocation19_spill] sm:$0xff]  ;;  %v5238_v50 = vld [vmem:[#allocation21_spill] sm:$0xff]  ;;  %v2032_v13 = vadd.f32 %v4580_v48, %v1692_v2 }
 0x132   :  { %v1697_v23 = vpop.f32.mrf.mxu0  ;;  %v1786_v24 = vpop.f32.mrf.mxu1  ;;  %2368 = vmatprep.subr.mxu0 %v2060_v41  ;;  %2457 = vmatprep.subr.mxu1 %v2062_v55  ;;  %v1686_v30 = vadd.f32 %v1685_v17, %v5236_v49  ;;  %v1779_v17 = vadd.f32 %v1778_v8, %v5239_v4  ;;  %v1680_v8 = vadd.f32 %v4657_v31, %v5241_v45  ;;  %v5247_v4 = vld [vmem:[#allocation36_spill] sm:$0xff] }
 0x133   :  { %v1698_v32 = vadd.f32 %v1697_v23, %v4533_v51  ;;  %2369 = vmatpush1.msra.mxu0 %v2059_v56  ;;  %2402 = vmatprep.mubr.f32.mxu0 %v5235_v42  ;;  %v1787_v21 = vadd.f32 %v1786_v24, %v4535_v52  ;;  %v1690_v51 = vadd.f32 %v1689_v10, %v5238_v50  ;;  %v2096_v25 = vmax.f32 %v2032_v13, 0.0 }
 0x134   :  { %v4721_v58 = vpop.f32.mrf.mxu0  ;;  %v4723_v7 = vpop.f32.mrf.mxu1  ;;  %2458 = vmatpush1.msra.mxu1 %v2061_v62  ;;  %2491 = vmatprep.mubr.f32.mxu1 %v5235_v42  ;;  %v2047_v20 = vadd.f32 %v4569_v61, %v1696_v40  ;;  %v2049_v14 = vadd.f32 %v4569_v61, %v1785_v57  ;;  %v2034_v36 = vadd.f32 %v4580_v48, %v1781_v19 }
 0x135   :  { %v2048_v47 = vadd.f32 %v4569_v61, %v1698_v32  ;;  %3634 = vmatmul.mubr.msk.f32.vlgmr.msra.gmra.mxu0 %vm2147_vm15, %v4624_v0  ;;  %3638 = vmatmul.mubr.msk.f32.vlgmr.msra.gmra.mxu1 %vm2147_vm15, %v4624_v0  ;;  %v2050_v52 = vadd.f32 %v4569_v61, %v1787_v21  ;;  %v1773_v37 = vadd.f32 %v4677_v59, %v5245_v63  ;;  %v5246_v59 = vld [vmem:[#allocation14_spill] sm:$0xff] }
 0x136   :  { %v4736_v43 = vpop.f32.mrf.mxu0  ;;  %v4738_v38 = vpop.f32.mrf.mxu1  ;;  %2408 = vmatprep.mubr.f32.mxu0 %v5235_v42  ;;  %2497 = vmatprep.mubr.f32.mxu1 %v5235_v42  ;;  %v2031_v29 = vadd.f32 %v4580_v48, %v1690_v51  ;;  %v2111_v44 = vmax.f32 %v2047_v20, 0.0  ;;  %v2016_v18 = vadd.f32 %v4571_v39, %v1686_v30  ;;  %v2033_v33 = vadd.f32 %v4580_v48, %v1779_v17 }
 0x137   :  { %v2112_v5 = vmax.f32 %v2048_v47, 0.0  ;;  %v2114_v9 = vmax.f32 %v2050_v52, 0.0  ;;  %v2113_v27 = vmax.f32 %v2049_v14, 0.0  ;;  %v1767_v41 = vadd.f32 %v4645_v54, %v5246_v59 }
 0x138   :  { %v4747_v10 = vpop.f32.mrf.mxu0  ;;  %v4749_v6 = vpop.f32.mrf.mxu1  ;;  %v1999_v40 = vadd.f32 %v4606_v34, %v1678_v16  ;;  %v2015_v23 = vadd.f32 %v4571_v39, %v1684_v12  ;;  %v2018_v24 = vadd.f32 %v4571_v39, %v1775_v35  ;;  %v2098_v62 = vmax.f32 %v2034_v36, 0.0  ;;  %v5249_v16 = vld [vmem:[#allocation37_spill] sm:$0xff]  ;;  %v5250_v12 = vld [vmem:[#allocation34_spill] sm:$0xff] }
 0x139   :  { %2540 = vmatprep.subr.mxu0 %v2112_v5  ;;  %3635 = vmatmul.mubr.msk.f32.gmra.mxu0 %vm2147_vm15, %v4639_v28  ;;  %v2000_v2 = vadd.f32 %v4606_v34, %v1680_v8  ;;  %v2017_v57 = vadd.f32 %v4571_v39, %v1773_v37  ;;  %v2095_v32 = vmax.f32 %v2031_v29, 0.0  ;;  %v2002_v49 = vadd.f32 %v4606_v34, %v1769_v53  ;;  %v5248_v5 = vld [vmem:[#allocation32_spill] sm:$0xff]  ;;  %v5251_v35 = vld [vmem:[#allocation38_spill] sm:$0xff]  ;;  %v5253_v37 = vld [vmem:[#allocation33_spill] sm:$0xff] }
 0x13a   :  { %3639 = vmatmul.mubr.msk.f32.gmra.mxu1 %vm2147_vm15, %v4639_v28  ;;  %v4767_v31 = vpop.f32.mrf.mxu0  ;;  %v4769_v22 = vpop.f32.mrf.mxu1  ;;  %2414 = vmatprep.mubr.f32.mxu0 %v5235_v42  ;;  %v2080_v30 = vmax.f32 %v2016_v18, 0.0  ;;  %v2097_v3 = vmax.f32 %v2033_v33, 0.0  ;;  %v2001_v19 = vadd.f32 %v4606_v34, %v1767_v41  ;;  %v2063_v51 = vmax.f32 %v1999_v40, 0.0  ;;  %v5255_v41 = vld [vmem:[#allocation28_spill] sm:$0xff] }
 0x13b   :  { %2503 = vmatprep.mubr.f32.mxu1 %v5235_v42  ;;  %2629 = vmatprep.subr.mxu1 %v2114_v9  ;;  %v2079_v20 = vmax.f32 %v2015_v23, 0.0  ;;  %v2082_v52 = vmax.f32 %v2018_v24, 0.0  ;;  %v2064_v13 = vmax.f32 %v2000_v2, 0.0  ;;  %v2081_v14 = vmax.f32 %v2017_v57, 0.0  ;;  %v5257_v2 = vld [vmem:[#allocation31_spill] sm:$0xff] }
 0x13c   :  { %2541 = vmatpush1.msra.mxu0 %v2111_v44  ;;  %v1867_v55 = vpop.f32.mrf.mxu0  ;;  %v1956_v56 = vpop.f32.mrf.mxu1  ;;  %2630 = vmatpush1.msra.mxu1 %v2113_v27  ;;  %v2066_v11 = vmax.f32 %v2002_v49, 0.0  ;;  %v2065_v63 = vmax.f32 %v2001_v19, 0.0  ;;  %v5254_v44 = vld [vmem:[#allocation35_spill] sm:$0xff] }
 0x13d   :  { %2542 = vmatprep.subr.mxu0 %v2096_v25  ;;  %3636 = vmatmul.mubr.msk.f32.gmra.mxu0 %vm2147_vm15, %v4669_v46  ;;  %v1868_v15 = vadd.f32 %v1867_v55, %v5248_v5  ;;  %v1957_v29 = vadd.f32 %v1956_v56, %v5253_v37  ;;  %v1862_v55 = vadd.f32 %v4747_v10, %v5255_v41  ;;  %v5256_v56 = vld [vmem:[#allocation30_spill] sm:$0xff] }
 0x13e   :  { %3640 = vmatmul.mubr.msk.f32.gmra.mxu1 %vm2147_vm15, %v4669_v46  ;;  %v1869_v54 = vpop.f32.mrf.mxu0  ;;  %v1958_v21 = vpop.f32.mrf.mxu1  ;;  %2631 = vmatprep.subr.mxu1 %v2098_v62  ;;  %v1864_v40 = vadd.f32 %v4767_v31, %v5256_v56  ;;  %v5258_v31 = vld [vmem:[#allocation29_spill] sm:$0xff] }
 0x13f   :  { %2420 = vmatprep.mubr.f32.mxu0 %v5235_v42  ;;  %2509 = vmatprep.mubr.f32.mxu1 %v5235_v42  ;;  %v1870_v1 = vadd.f32 %v1869_v54, %v5250_v12  ;;  %v1959_v18 = vadd.f32 %v1958_v21, %v5254_v44  ;;  %v2035_v10 = vadd.f32 %v4580_v48, %v1868_v15 }
 0x140   :  { %2543 = vmatpush1.msra.mxu0 %v2095_v32  ;;  %v1873_v47 = vpop.f32.mrf.mxu0  ;;  %v1962_v50 = vpop.f32.mrf.mxu1  ;;  %2632 = vmatpush1.msra.mxu1 %v2097_v3  ;;  %v1951_v54 = vadd.f32 %v4749_v6, %v5258_v31  ;;  %v2037_v21 = vadd.f32 %v4580_v48, %v1957_v29  ;;  %v5260_v3 = vld [vmem:[#allocation26_spill] sm:$0xff] }
 0x141   :  { %2544 = vmatprep.subr.mxu0 %v2080_v30  ;;  %v1874_v17 = vadd.f32 %v1873_v47, %v5247_v4  ;;  %3637 = vmatmul.mubr.msk.f32.gmra.mxu0 %vm2147_vm15, %v4705_v26  ;;  %v1963_v9 = vadd.f32 %v1962_v50, %v5249_v16  ;;  %v2036_v23 = vadd.f32 %v4580_v48, %v1870_v1  ;;  %v5261_v47 = vld [vmem:[#allocation25_spill] sm:$0xff] }
 0x142   :  { %3641 = vmatmul.mubr.msk.f32.gmra.mxu1 %vm2147_vm15, %v4705_v26  ;;  %v1875_v45 = vpop.f32.mrf.mxu0  ;;  %v1964_v8 = vpop.f32.mrf.mxu1  ;;  %2633 = vmatprep.subr.mxu1 %v2082_v52  ;;  %v2038_v57 = vadd.f32 %v4580_v48, %v1959_v18  ;;  %v1858_v19 = vadd.f32 %v4736_v43, %v5260_v3  ;;  %v1945_v50 = vadd.f32 %v4723_v7, %v5261_v47  ;;  %v2099_v43 = vmax.f32 %v2035_v10, 0.0 }
 0x143   :  { %2545 = vmatpush1.msra.mxu0 %v2079_v20  ;;  %v1876_v36 = vadd.f32 %v1875_v45, %v5251_v35  ;;  %v1965_v53 = vadd.f32 %v1964_v8, %v5252_v60  ;;  %2634 = vmatpush1.msra.mxu1 %v2081_v14  ;;  %v2051_v33 = vadd.f32 %v4569_v61, %v1874_v17  ;;  %v2100_v20 = vmax.f32 %v2036_v23, 0.0 }
 0x144   :  { %2546 = vmatprep.subr.mxu0 %v2064_v13  ;;  %2635 = vmatprep.subr.mxu1 %v2066_v11  ;;  %v2053_v25 = vadd.f32 %v4569_v61, %v1963_v9  ;;  %v2020_v48 = vadd.f32 %v4571_v39, %v1864_v40  ;;  %v2102_v4 = vmax.f32 %v2038_v57, 0.0  ;;  %v2021_v7 = vadd.f32 %v4571_v39, %v1951_v54 }
 0x145   :  { %2547 = vmatpush1.msra.mxu0 %v2063_v51  ;;  %v2052_v27 = vadd.f32 %v4569_v61, %v1876_v36  ;;  %v2054_v59 = vadd.f32 %v4569_v61, %v1965_v53  ;;  %2580 = vmatprep.mubr.f32.mxu0 %v5235_v42  ;;  %v1953_v61 = vadd.f32 %v4769_v22, %v5257_v2  ;;  %v2115_v32 = vmax.f32 %v2051_v33, 0.0  ;;  %v5259_v22 = vld [vmem:[#allocation24_spill] sm:$0xff]  ;;  %v5262_v51 = vld [vmem:[#allocation27_spill] sm:$0xff] }
 0x146   :  { %2636 = vmatpush1.msra.mxu1 %v2065_v63  ;;  %2669 = vmatprep.mubr.f32.mxu1 %v5235_v42  ;;  %v2117_v49 = vmax.f32 %v2053_v25, 0.0  ;;  %v1856_v30 = vadd.f32 %v4721_v58, %v5259_v22  ;;  %v1947_v6 = vadd.f32 %v4738_v38, %v5262_v51  ;;  %v2019_v58 = vadd.f32 %v4571_v39, %v1862_v55  ;;  %v4903_v55 = vld [vmem:[%s5175_s2] sm:$0xff] }
 0x147   :  { %3642 = vmatmul.mubr.msk.f32.vlgmr.msra.gmra.mxu0 %vm2147_vm15, %v4624_v0  ;;  %v2116_v24 = vmax.f32 %v2052_v27, 0.0  ;;  %v2118_v62 = vmax.f32 %v2054_v59, 0.0  ;;  %3646 = vmatmul.mubr.msk.f32.vlgmr.msra.gmra.mxu1 %vm2147_vm15, %v4624_v0  ;;  %v2022_v52 = vadd.f32 %v4571_v39, %v1953_v61  ;;  %v2101_v38 = vmax.f32 %v2037_v21, 0.0  ;;  %v5263_v21 = vld [vmem:[#allocation7_spill] sm:$0xff] }
 0x148   :  { %2586 = vmatprep.mubr.f32.mxu0 %v5235_v42  ;;  %2675 = vmatprep.mubr.f32.mxu1 %v5235_v42  ;;  %v2004_v17 = vadd.f32 %v4606_v34, %v1858_v19  ;;  %v2003_v13 = vadd.f32 %v4606_v34, %v1856_v30  ;;  %v2006_v14 = vadd.f32 %v4606_v34, %v1947_v6  ;;  %v2084_v5 = vmax.f32 %v2020_v48, 0.0  ;;  %v5264_v30 = vld [vmem:[#allocation8_spill] sm:$0xff] }
 0x149   :  { %2718 = vmatprep.subr.mxu0 %v2116_v24  ;;  %2807 = vmatprep.subr.mxu1 %v2118_v62  ;;  %v2005_v15 = vadd.f32 %v4606_v34, %v1945_v50  ;;  %v2083_v39 = vmax.f32 %v2019_v58, 0.0  ;;  %v2086_v16 = vmax.f32 %v2022_v52, 0.0  ;;  %v2085_v9 = vmax.f32 %v2021_v7, 0.0 }
 0x14a   :  { %2719 = vmatpush1.msra.mxu0 %v2115_v32  ;;  %2808 = vmatpush1.msra.mxu1 %v2117_v49  ;;  %v2068_v45 = vmax.f32 %v2004_v17, 0.0  ;;  %v2067_v8 = vmax.f32 %v2003_v13, 0.0  ;;  %v2070_v11 = vmax.f32 %v2006_v14, 0.0  ;;  %v3175_v49 = vrot.slane %v4903_v55, %v5263_v21 }
 0x14b   :  { %3643 = vmatmul.mubr.msk.f32.gmra.mxu0 %vm2147_vm15, %v4639_v28  ;;  %3647 = vmatmul.mubr.msk.f32.gmra.mxu1 %vm2147_vm15, %v4639_v28  ;;  %v2069_v34 = vmax.f32 %v2005_v15, 0.0  ;;  %v4912_v22 = vstv %s5176_s9  ;;  %v3183_v3 = vrot.slane %v4903_v55, %v5264_v30 }
 0x14c   :  { %2592 = vmatprep.mubr.f32.mxu0 %v5235_v42  ;;  %2681 = vmatprep.mubr.f32.mxu1 %v5235_v42 }
 0x14d   :  { %2720 = vmatprep.subr.mxu0 %v2100_v20  ;;  %2809 = vmatprep.subr.mxu1 %v2102_v4 }
 0x14e   :  { %2721 = vmatpush1.msra.mxu0 %v2099_v43  ;;  %2810 = vmatpush1.msra.mxu1 %v2101_v38 }
 0x14f   :  { %3644 = vmatmul.mubr.msk.f32.gmra.mxu0 %vm2147_vm15, %v4669_v46  ;;  %3648 = vmatmul.mubr.msk.f32.gmra.mxu1 %vm2147_vm15, %v4669_v46 }
 0x150   :  { %2598 = vmatprep.mubr.f32.mxu0 %v5235_v42  ;;  %2687 = vmatprep.mubr.f32.mxu1 %v5235_v42 }
 0x151   :  { %2722 = vmatprep.subr.mxu0 %v2084_v5  ;;  %2811 = vmatprep.subr.mxu1 %v2086_v16 }
 0x152   :  { %2723 = vmatpush1.msra.mxu0 %v2083_v39  ;;  %2812 = vmatpush1.msra.mxu1 %v2085_v9 }
 0x153   :  { %3645 = vmatmul.mubr.msk.f32.gmra.mxu0 %vm2147_vm15, %v4705_v26  ;;  %3649 = vmatmul.mubr.msk.f32.gmra.mxu1 %vm2147_vm15, %v4705_v26 }
 0x154   :  { %2724 = vmatprep.subr.mxu0 %v2068_v45  ;;  %2813 = vmatprep.subr.mxu1 %v2070_v11 }
 0x155   :  { %2725 = vmatpush1.msra.mxu0 %v2067_v8  ;;  %2758 = vmatprep.mubr.f32.mxu0 %v5235_v42 }
 0x156   :  { %2814 = vmatpush1.msra.mxu1 %v2069_v34  ;;  %2847 = vmatprep.mubr.f32.mxu1 %v5235_v42 }
 0x157   :  { %3650 = vmatmul.mubr.msk.f32.vlgmr.msra.gmra.mxu0 %vm2147_vm15, %v4624_v0  ;;  %3654 = vmatmul.mubr.msk.f32.vlgmr.msra.gmra.mxu1 %vm2147_vm15, %v4624_v0  ;;  %v4882_v0 = vpop.permute.xlu0 %2129 }
 0x158   :  { %2764 = vmatprep.mubr.f32.mxu0 %v5235_v42  ;;  %2853 = vmatprep.mubr.f32.mxu1 %v5235_v42 }
 0x15b   :  { %3651 = vmatmul.mubr.msk.f32.gmra.mxu0 %vm2147_vm15, %v4639_v28  ;;  %3655 = vmatmul.mubr.msk.f32.gmra.mxu1 %vm2147_vm15, %v4639_v28  ;;  %v4884_v28 = vpop.permute.xlu1 %2134  ;;  %v4886_v35 = vpop.permute.xlu0 %2139 }
 0x15c   :  { %2770 = vmatprep.mubr.f32.mxu0 %v5235_v42  ;;  %2859 = vmatprep.mubr.f32.mxu1 %v5235_v42 }
 0x15f   :  { %3652 = vmatmul.mubr.msk.f32.gmra.mxu0 %vm2147_vm15, %v4669_v46  ;;  %3656 = vmatmul.mubr.msk.f32.gmra.mxu1 %vm2147_vm15, %v4669_v46  ;;  %v4890_v37 = vpop.permute.xlu1 %2144  ;;  %v4894_v33 = vpop.permute.xlu0 %2942 }
 0x160   :  { %2776 = vmatprep.mubr.f32.mxu0 %v5235_v42  ;;  %2865 = vmatprep.mubr.f32.mxu1 %v5235_v42 }
 0x163   :  { %3653 = vmatmul.mubr.msk.f32.gmra.mxu0 %vm2147_vm15, %v4705_v26  ;;  %3657 = vmatmul.mubr.msk.f32.gmra.mxu1 %vm2147_vm15, %v4705_v26  ;;  %v4916_v19 = vpop.permute.xlu1 %2947  ;;  %v4922_v43 = vpop.permute.xlu0 %2952 }
 0x1e1   :  { %v2226_v12 = vpop.f32.mrf.mxu0  ;;  %v2315_v1 = vpop.f32.mrf.mxu1 }
 0x1e2   :  { %v2227_v60 = vadd.f32 %v2226_v12, %v4882_v0  ;;  %v2316_v42 = vadd.f32 %v2315_v1, %v4882_v0 }
 0x1e3   :  { %v2228_v36 = vpop.f32.mrf.mxu0  ;;  %v2317_v46 = vpop.f32.mrf.mxu1 }
 0x1e4   :  { %v2229_v25 = vadd.f32 %v2228_v36, %v4882_v0  ;;  %v2318_v27 = vadd.f32 %v2317_v46, %v4882_v0  ;;  %v2872_v56 = vmax.f32 %v2227_v60, 0.0  ;;  %v2874_v40 = vmax.f32 %v2316_v42, 0.0 }
 0x1e5   :  { %v2232_v53 = vpop.f32.mrf.mxu0  ;;  %v2321_v63 = vpop.f32.mrf.mxu1 }
 0x1e6   :  { %v2233_v26 = vadd.f32 %v2232_v53, %v4884_v28  ;;  %v2322_v29 = vadd.f32 %v2321_v63, %v4884_v28  ;;  %v2873_v47 = vmax.f32 %v2229_v25, 0.0  ;;  %v2875_v50 = vmax.f32 %v2318_v27, 0.0 }
 0x1e7   :  { %v2234_v44 = vpop.f32.mrf.mxu0  ;;  %v2323_v18 = vpop.f32.mrf.mxu1  ;;  %v2960_v4 = vmul.f32 %v4894_v33, %v2872_v56  ;;  %v2962_v7 = vmul.f32 %v4894_v33, %v2874_v40 }
 0x1e8   :  { %v2235_v59 = vadd.f32 %v2234_v44, %v4884_v28  ;;  %v2324_v41 = vadd.f32 %v2323_v18, %v4884_v28  ;;  %v2888_v23 = vmax.f32 %v2233_v26, 0.0  ;;  %v2890_v24 = vmax.f32 %v2322_v29, 0.0  ;;  %v4938_v29 = vpop.permute.xlu1 %2957 }
 0x1e9   :  { %v2238_v62 = vpop.f32.mrf.mxu0  ;;  %v2327_v2 = vpop.f32.mrf.mxu1  ;;  %v2961_v9 = vmul.f32 %v4894_v33, %v2873_v47  ;;  %v2963_v45 = vmul.f32 %v4894_v33, %v2875_v50 }
 0x1ea   :  { %v2889_v61 = vmax.f32 %v2235_v59, 0.0  ;;  %v2891_v10 = vmax.f32 %v2324_v41, 0.0  ;;  %v2239_v57 = vadd.f32 %v2238_v62, %v4886_v35  ;;  %v2328_v32 = vadd.f32 %v2327_v2, %v4886_v35  ;;  %v5265_v62 = vld [vmem:[#allocation5_spill] sm:$0xff] }
 0x1eb   :  { %v2240_v31 = vpop.f32.mrf.mxu0  ;;  %v2329_v54 = vpop.f32.mrf.mxu1  ;;  %v2976_v48 = vmul.f32 %v4916_v19, %v2888_v23  ;;  %v2978_v20 = vmul.f32 %v4916_v19, %v2890_v24  ;;  %v3179_v2 = vrot.slane %v4903_v55, %v5265_v62 }
 0x1ec   :  { %v2904_v51 = vmax.f32 %v2239_v57, 0.0  ;;  %v2906_v6 = vmax.f32 %v2328_v32, 0.0  ;;  %v2241_v58 = vadd.f32 %v2240_v31, %v4886_v35  ;;  %v2330_v52 = vadd.f32 %v2329_v54, %v4886_v35 }
 0x1ed   :  { %v2977_v38 = vmul.f32 %v4916_v19, %v2889_v61  ;;  %v2979_v17 = vmul.f32 %v4916_v19, %v2891_v10  ;;  %v3024_v34 = vadd.f32 %v2976_v48, %v2960_v4  ;;  %v3042_v12 = vadd.f32 %v2978_v20, %v2962_v7  ;;  %v5266_v61 = vld [vmem:[#allocation6_spill] sm:$0xff]  ;;  %v5268_v4 = vld [vmem:[#allocation12_spill] sm:$0xff] }
 0x1ee   :  { %v2992_v13 = vmul.f32 %v4922_v43, %v2904_v51  ;;  %v2994_v14 = vmul.f32 %v4922_v43, %v2906_v6  ;;  %v2905_v5 = vmax.f32 %v2241_v58, 0.0  ;;  %v2907_v15 = vmax.f32 %v2330_v52, 0.0  ;;  %v5267_v58 = vld [vmem:[#allocation11_spill] sm:$0xff] }
 0x1ef   :  { %v2244_v39 = vpop.f32.mrf.mxu0  ;;  %v2333_v16 = vpop.f32.mrf.mxu1  ;;  %v3033_v44 = vadd.f32 %v2977_v38, %v2961_v9  ;;  %v3051_v18 = vadd.f32 %v2979_v17, %v2963_v45  ;;  %v3187_v10 = vrot.slane %v4903_v55, %v5266_v61  ;;  %v3191_v52 = vrot.slane %v4903_v55, %v5267_v58 }
 0x1f0   :  { %v2245_v8 = vadd.f32 %v2244_v39, %v4890_v37  ;;  %v2334_v11 = vadd.f32 %v2333_v16, %v4890_v37  ;;  %v2993_v1 = vmul.f32 %v4922_v43, %v2905_v5  ;;  %v2995_v36 = vmul.f32 %v4922_v43, %v2907_v15 }
 0x1f1   :  { %v2246_v46 = vpop.f32.mrf.mxu0  ;;  %v2335_v60 = vpop.f32.mrf.mxu1  ;;  %v3025_v25 = vadd.f32 %v3024_v34, %v2992_v13  ;;  %v3043_v27 = vadd.f32 %v3042_v12, %v2994_v14  ;;  %v3199_v7 = vrot.slane %v4903_v55, %v5268_v4 }
 0x1f2   :  { %v2920_v42 = vmax.f32 %v2245_v8, 0.0  ;;  %v2922_v53 = vmax.f32 %v2334_v11, 0.0  ;;  %v2247_v63 = vadd.f32 %v2246_v46, %v4890_v37  ;;  %v2336_v26 = vadd.f32 %v2335_v60, %v4890_v37 }
 0x1f3   :  { %v3034_v23 = vadd.f32 %v3033_v44, %v2993_v1  ;;  %v3052_v24 = vadd.f32 %v3051_v18, %v2995_v36 }
 0x1f4   :  { %v3008_v59 = vmul.f32 %v4938_v29, %v2920_v42  ;;  %v3010_v41 = vmul.f32 %v4938_v29, %v2922_v53  ;;  %v2921_v56 = vmax.f32 %v2247_v63, 0.0  ;;  %v2923_v40 = vmax.f32 %v2336_v26, 0.0  ;;  %v5269_v42 = vld [vmem:[#allocation9_spill] sm:$0xff] }
 0x1f5   :  { %v2404_v57 = vpop.f32.mrf.mxu0  ;;  %v2493_v32 = vpop.f32.mrf.mxu1  ;;  %v3195_v53 = vrot.slane %v4903_v55, %v5269_v42 }
 0x1f6   :  { %v3026_v31 = vadd.f32 %v3025_v25, %v3008_v59  ;;  %v3044_v54 = vadd.f32 %v3043_v27, %v3010_v41  ;;  %v3009_v47 = vmul.f32 %v4938_v29, %v2921_v56  ;;  %v3011_v50 = vmul.f32 %v4938_v29, %v2923_v40 }
 0x1f7   :  { %v2405_v51 = vadd.f32 %v2404_v57, %v4882_v0  ;;  %v2494_v6 = vadd.f32 %v2493_v32, %v4882_v0  ;;  %v2406_v48 = vpop.f32.mrf.mxu0  ;;  %v2495_v20 = vpop.f32.mrf.mxu1 }
 0x1f8   :  { %v3027_v38 = vrot.slane %v3026_v31, 4  ;;  %v3045_v17 = vrot.slane %v3044_v54, 4  ;;  %v3035_v13 = vadd.f32 %v3034_v23, %v3009_v47  ;;  %v3053_v14 = vadd.f32 %v3052_v24, %v3011_v50 }
 0x1f9   :  { %v2876_v5 = vmax.f32 %v2405_v51, 0.0  ;;  %v2878_v15 = vmax.f32 %v2494_v6, 0.0  ;;  %v2407_v39 = vadd.f32 %v2406_v48, %v4882_v0  ;;  %v2496_v16 = vadd.f32 %v2495_v20, %v4882_v0  ;;  %v2410_v9 = vpop.f32.mrf.mxu0 }
 0x1fa   :  { %v2499_v45 = vpop.f32.mrf.mxu1  ;;  %v3028_v8 = vadd.f32 %v3027_v38, %v3026_v31  ;;  %v3046_v11 = vadd.f32 %v3045_v17, %v3044_v54  ;;  %v3036_v34 = vrot.slane %v3035_v13, 4  ;;  %v3054_v12 = vrot.slane %v3053_v14, 4 }
 0x1fb   :  { %v2964_v1 = vmul.f32 %v4894_v33, %v2876_v5  ;;  %v2966_v36 = vmul.f32 %v4894_v33, %v2878_v15  ;;  %v2412_v46 = vpop.f32.mrf.mxu0  ;;  %v2877_v25 = vmax.f32 %v2407_v39, 0.0  ;;  %v2879_v27 = vmax.f32 %v2496_v16, 0.0 }
 0x1fc   :  { %v2501_v60 = vpop.f32.mrf.mxu1  ;;  %v3029_v63 = vrot.slane %v3028_v8, 2  ;;  %v3047_v26 = vrot.slane %v3046_v11, 2  ;;  %v3037_v44 = vadd.f32 %v3036_v34, %v3035_v13  ;;  %v3055_v18 = vadd.f32 %v3054_v12, %v3053_v14 }
 0x1fd   :  { %v2411_v59 = vadd.f32 %v2410_v9, %v4884_v28  ;;  %v2500_v41 = vadd.f32 %v2499_v45, %v4884_v28  ;;  %v2416_v56 = vpop.f32.mrf.mxu0  ;;  %v2413_v47 = vadd.f32 %v2412_v46, %v4884_v28  ;;  %v2502_v50 = vadd.f32 %v2501_v60, %v4884_v28 }
 0x1fe   :  { %v2505_v40 = vpop.f32.mrf.mxu1  ;;  %v3030_v23 = vadd.f32 %v3029_v63, %v3028_v8  ;;  %v3048_v24 = vadd.f32 %v3047_v26, %v3046_v11  ;;  %v3038_v57 = vrot.slane %v3037_v44, 2  ;;  %v3056_v32 = vrot.slane %v3055_v18, 2 }
 0x1ff   :  { %v2892_v31 = vmax.f32 %v2411_v59, 0.0  ;;  %v2894_v54 = vmax.f32 %v2500_v41, 0.0  ;;  %v2418_v51 = vpop.f32.mrf.mxu0  ;;  %v2893_v5 = vmax.f32 %v2413_v47, 0.0  ;;  %v2895_v15 = vmax.f32 %v2502_v50, 0.0 }
 0x200   :  { %v2507_v6 = vpop.f32.mrf.mxu1  ;;  %v3031_v48 = vrot.slane %v3030_v23, 1  ;;  %v3049_v20 = vrot.slane %v3048_v24, 1  ;;  %v3039_v38 = vadd.f32 %v3038_v57, %v3037_v44  ;;  %v3057_v17 = vadd.f32 %v3056_v32, %v3055_v18 }
 0x201   :  { %v2980_v13 = vmul.f32 %v4916_v19, %v2892_v31  ;;  %v2982_v14 = vmul.f32 %v4916_v19, %v2894_v54  ;;  %v2422_v39 = vpop.f32.mrf.mxu0  ;;  %v2965_v34 = vmul.f32 %v4894_v33, %v2877_v25  ;;  %v2967_v12 = vmul.f32 %v4894_v33, %v2879_v27 }
 0x202   :  { %v2511_v16 = vpop.f32.mrf.mxu1  ;;  %v3032_v9 = vadd.f32 %v3031_v48, %v3030_v23  ;;  %v3050_v45 = vadd.f32 %v3049_v20, %v3048_v24  ;;  %v3040_v8 = vrot.slane %v3039_v38, 1  ;;  %v3058_v11 = vrot.slane %v3057_v17, 1 }
 0x203   :  { %v3060_v46 = vadd.f32 %v2980_v13, %v2964_v1  ;;  %v3078_v60 = vadd.f32 %v2982_v14, %v2966_v36  ;;  %v2424_v63 = vpop.f32.mrf.mxu0  ;;  %v2981_v23 = vmul.f32 %v4916_v19, %v2893_v5  ;;  %v2983_v25 = vmul.f32 %v4916_v19, %v2895_v15 }
 0x204   :  { %v2513_v26 = vpop.f32.mrf.mxu1  ;;  %v3252_v44 = vadd.f32 %v3175_v49, %v3032_v9  ;;  %v3254_v18 = vadd.f32 %v3183_v3, %v3050_v45  ;;  %v3041_v59 = vadd.f32 %v3040_v8, %v3039_v38  ;;  %v3059_v41 = vadd.f32 %v3058_v11, %v3057_v17 }
 0x205   :  { %v2417_v27 = vadd.f32 %v2416_v56, %v4886_v35  ;;  %v2506_v1 = vadd.f32 %v2505_v40, %v4886_v35  ;;  %v2419_v54 = vadd.f32 %v2418_v51, %v4886_v35  ;;  %v2508_v56 = vadd.f32 %v2507_v6, %v4886_v35 }
 0x206   :  { %v3270_v36 = vadd.f32 %v4912_v22, %v3252_v44  ;;  %v3272_v24 = vadd.f32 %v4912_v22, %v3254_v18  ;;  %v3253_v49 = vadd.f32 %v3179_v2, %v3041_v59  ;;  %v3255_v3 = vadd.f32 %v3187_v10, %v3059_v41 }
 0x207   :  { %v2582_v57 = vpop.f32.mrf.mxu0  ;;  %v2908_v32 = vmax.f32 %v2417_v27, 0.0  ;;  %v2910_v31 = vmax.f32 %v2506_v1, 0.0  ;;  %v2671_v40 = vpop.f32.mrf.mxu1  ;;  %v2909_v10 = vmax.f32 %v2419_v54, 0.0  ;;  %v2911_v13 = vmax.f32 %v2508_v56, 0.0 }
 0x208   :  { %v3658_v47 = vmul.f32 -1.442695, %v3270_v36  ;;  %v3660_v50 = vmul.f32 -1.442695, %v3272_v24  ;;  %v3271_v48 = vadd.f32 %v4912_v22, %v3253_v49  ;;  %v3273_v20 = vadd.f32 %v4912_v22, %v3255_v3 }
 0x209   :  { %v2584_v38 = vpop.f32.mrf.mxu0  ;;  %v2996_v2 = vmul.f32 %v4922_v43, %v2908_v32  ;;  %v2998_v17 = vmul.f32 %v4922_v43, %v2910_v31  ;;  %v2673_v14 = vpop.f32.mrf.mxu1  ;;  %v2423_v6 = vadd.f32 %v2422_v39, %v4890_v37  ;;  %v3069_v15 = vadd.f32 %v2981_v23, %v2965_v34 }
 0x20a   :  { %3728 = vpow2.f32 %v3658_v47  ;;  %v3659_v5 = vmul.f32 -1.442695, %v3271_v48  ;;  %v3661_v51 = vmul.f32 -1.442695, %v3273_v20  ;;  %v3087_v9 = vadd.f32 %v2983_v25, %v2967_v12 }
 0x20b   :  { %3730 = vpow2.f32 %v3660_v50  ;;  %v3061_v45 = vadd.f32 %v3060_v46, %v2996_v2  ;;  %v2588_v8 = vpop.f32.mrf.mxu0  ;;  %v2997_v11 = vmul.f32 %v4922_v43, %v2909_v10  ;;  %v2924_v44 = vmax.f32 %v2423_v6, 0.0  ;;  %v2677_v1 = vpop.f32.mrf.mxu1 }
 0x20c   :  { %3732 = vpow2.f32 %v3659_v5  ;;  %v2512_v18 = vadd.f32 %v2511_v16, %v4890_v37  ;;  %v2999_v59 = vmul.f32 %v4922_v43, %v2911_v13  ;;  %v2425_v41 = vadd.f32 %v2424_v63, %v4890_v37 }
 0x20d   :  { %3734 = vpow2.f32 %v3661_v51  ;;  %v2514_v27 = vadd.f32 %v2513_v26, %v4890_v37  ;;  %v3079_v39 = vadd.f32 %v3078_v60, %v2998_v17  ;;  %v3012_v34 = vmul.f32 %v4938_v29, %v2924_v44  ;;  %v2590_v24 = vpop.f32.mrf.mxu0  ;;  %v5270_v17 = vld [vmem:[#allocation10_spill] sm:$0xff] }
 0x20e   :  { %v2926_v12 = vmax.f32 %v2512_v18, 0.0  ;;  %v2583_v46 = vadd.f32 %v2582_v57, %v4882_v0  ;;  %v2925_v23 = vmax.f32 %v2425_v41, 0.0  ;;  %v2672_v36 = vadd.f32 %v2671_v40, %v4882_v0  ;;  %v2679_v57 = vpop.f32.mrf.mxu1 }
 0x20f   :  { %v2927_v25 = vmax.f32 %v2514_v27, 0.0  ;;  %v2585_v16 = vadd.f32 %v2584_v38, %v4882_v0  ;;  %v3070_v49 = vadd.f32 %v3069_v15, %v2997_v11  ;;  %v3062_v3 = vadd.f32 %v3061_v45, %v3012_v34  ;;  %v2594_v13 = vpop.f32.mrf.mxu0 }
 0x210   :  { %v3014_v63 = vmul.f32 %v4938_v29, %v2926_v12  ;;  %v2674_v26 = vadd.f32 %v2673_v14, %v4882_v0  ;;  %v3088_v32 = vadd.f32 %v3087_v9, %v2999_v59  ;;  %v3013_v60 = vmul.f32 %v4938_v29, %v2925_v23  ;;  %v2683_v44 = vpop.f32.mrf.mxu1 }
 0x211   :  { %v3015_v31 = vmul.f32 %v4938_v29, %v2927_v25  ;;  %v2880_v54 = vmax.f32 %v2583_v46, 0.0  ;;  %v3063_v56 = vrot.slane %v3062_v3, 4  ;;  %v2882_v50 = vmax.f32 %v2672_v36, 0.0  ;;  %v2596_v23 = vpop.f32.mrf.mxu0 }
 0x212   :  { %v3080_v47 = vadd.f32 %v3079_v39, %v3014_v63  ;;  %v2881_v40 = vmax.f32 %v2585_v16, 0.0  ;;  %v3795_v48 = vmov 1966171168   ;;  %v3071_v38 = vadd.f32 %v3070_v49, %v3013_v60 }
 0x213   :  { %v5006_v20 = vunpack.c.l.s4 %v3795_v48  ;;  %v3089_v2 = vadd.f32 %v3088_v32, %v3015_v31  ;;  %v3203_v10 = vrot.slane %v4903_v55, %v5270_v17  ;;  %v3064_v14 = vadd.f32 %v3063_v56, %v3062_v3  ;;  %v2685_v31 = vpop.f32.mrf.mxu1 }
 0x214   :  { %v3081_v5 = vrot.slane %v3080_v47, 4  ;;  %v2883_v51 = vmax.f32 %v2674_v26, 0.0  ;;  %v2589_v6 = vadd.f32 %v2588_v8, %v4884_v28  ;;  %v3072_v15 = vrot.slane %v3071_v38, 4 }
 0x215   :  { %v3090_v9 = vrot.slane %v3089_v2, 4  ;;  %v2968_v45 = vmul.f32 %v4894_v33, %v2880_v54  ;;  %v2678_v11 = vadd.f32 %v2677_v1, %v4884_v28  ;;  %v3065_v18 = vrot.slane %v3064_v14, 2 }
 0x216   :  { %v3082_v59 = vadd.f32 %v3081_v5, %v3080_v47  ;;  %v2970_v41 = vmul.f32 %v4894_v33, %v2882_v50  ;;  %v5015_v27 = vmul.f32 %v4894_v33, %v2881_v40  ;;  %v3073_v34 = vadd.f32 %v3072_v15, %v3071_v38 }
 0x217   :  { %v3729_v39 = vpop.eup %3728  ;;  %v3091_v12 = vadd.f32 %v3090_v9, %v3089_v2  ;;  %v2896_v46 = vmax.f32 %v2589_v6, 0.0  ;;  %v2591_v8 = vadd.f32 %v2590_v24, %v4884_v28  ;;  %v3066_v16 = vadd.f32 %v3065_v18, %v3064_v14  ;;  %v2600_v14 = vpop.f32.mrf.mxu0 }
 0x218   :  { %v3731_v25 = vpop.eup %3730  ;;  %v3334_v36 = vadd.f32 1.0, %v3729_v39  ;;  %v3083_v49 = vrot.slane %v3082_v59, 2  ;;  %v5019_v1 = vmul.f32 %v4894_v33, %v2883_v51  ;;  %v3074_v26 = vrot.slane %v3073_v34, 2  ;;  %v2689_v18 = vpop.f32.mrf.mxu1 }
 0x219   :  { %v3733_v3 = vpop.eup %3732  ;;  %v3336_v63 = vadd.f32 1.0, %v3731_v25  ;;  %v3092_v32 = vrot.slane %v3091_v12, 2  ;;  %v2898_v60 = vmax.f32 %v2678_v11, 0.0  ;;  %v3067_v47 = vrot.slane %v3066_v16, 1  ;;  %v2602_v25 = vpop.f32.mrf.mxu0 }
 0x21a   :  { %v3735_v54 = vpop.eup %3734  ;;  %v3335_v56 = vadd.f32 1.0, %v3733_v3  ;;  %v3084_v50 = vadd.f32 %v3083_v49, %v3082_v59  ;;  %v2680_v24 = vadd.f32 %v2679_v57, %v4884_v28  ;;  %v3075_v40 = vadd.f32 %v3074_v26, %v3073_v34 }
 0x21b   :  { %v3093_v48 = vadd.f32 %v3092_v32, %v3091_v12  ;;  %v2984_v38 = vmul.f32 %v4916_v19, %v2896_v46  ;;  %v2897_v2 = vmax.f32 %v2591_v8, 0.0  ;;  %3736 = vrcp.f32 %v3334_v36 }
 0x21c   :  { %v3337_v5 = vadd.f32 1.0, %v3735_v54  ;;  %v3068_v51 = vadd.f32 %v3067_v47, %v3066_v16  ;;  %v3085_v6 = vrot.slane %v3084_v50, 1  ;;  %3738 = vrcp.f32 %v3336_v63  ;;  %v5045_v47 = vpop.f32.mrf.mxu0 }
 0x21d   :  { %v3076_v15 = vrot.slane %v3075_v40, 1  ;;  %v3094_v9 = vrot.slane %v3093_v48, 1  ;;  %v2986_v11 = vmul.f32 %v4916_v19, %v2898_v60  ;;  %3740 = vrcp.f32 %v3335_v56 }
 0x21e   :  { %v3256_v57 = vadd.f32 %v3191_v52, %v3068_v51  ;;  %v3086_v59 = vadd.f32 %v3085_v6, %v3084_v50  ;;  %v2899_v39 = vmax.f32 %v2680_v24, 0.0  ;;  %v2595_v46 = vadd.f32 %v2594_v13, %v4886_v35 }
 0x21f   :  { %v3077_v34 = vadd.f32 %v3076_v15, %v3075_v40  ;;  %v3095_v12 = vadd.f32 %v3094_v9, %v3093_v48  ;;  %v2684_v8 = vadd.f32 %v2683_v44, %v4886_v35  ;;  %3742 = vrcp.f32 %v3337_v5  ;;  %v2691_v44 = vpop.f32.mrf.mxu1  ;;  %v5055_v15 = vpop.f32.mrf.mxu0 }
 0x220   :  { %v3274_v36 = vadd.f32 %v4912_v22, %v3256_v57  ;;  %v3258_v16 = vadd.f32 %v3199_v7, %v3086_v59  ;;  %v3096_v49 = vadd.f32 %v2984_v38, %v2968_v45  ;;  %v2912_v13 = vmax.f32 %v2595_v46, 0.0 }
 0x221   :  { %v3257_v52 = vadd.f32 %v3195_v53, %v3077_v34  ;;  %v3259_v3 = vadd.f32 %v3203_v10, %v3095_v12  ;;  %v2914_v63 = vmax.f32 %v2684_v8, 0.0  ;;  %v3114_v60 = vadd.f32 %v2986_v11, %v2970_v41  ;;  %v2849_v48 = vpop.f32.mrf.mxu1 }
 0x222   :  { %v3662_v26 = vmul.f32 -1.442695, %v3274_v36  ;;  %v3276_v32 = vadd.f32 %v4912_v22, %v3258_v16  ;;  %v2597_v54 = vadd.f32 %v2596_v23, %v4886_v35  ;;  %v2985_v56 = vmul.f32 %v4916_v19, %v2897_v2 }
 0x223   :  { %v3275_v7 = vadd.f32 %v4912_v22, %v3257_v52  ;;  %v3277_v45 = vadd.f32 %v4912_v22, %v3259_v3  ;;  %v2987_v53 = vmul.f32 %v4916_v19, %v2899_v39  ;;  %v2686_v50 = vadd.f32 %v2685_v31, %v4886_v35  ;;  %v2851_v46 = vpop.f32.mrf.mxu1 }
 0x224   :  { %3744 = vpow2.f32 %v3662_v26  ;;  %v3664_v55 = vmul.f32 -1.442695, %v3276_v32  ;;  %v2913_v10 = vmax.f32 %v2597_v54, 0.0  ;;  %v3000_v41 = vmul.f32 %v4922_v43, %v2912_v13 }
 0x225   :  { %v3663_v24 = vmul.f32 -1.442695, %v3275_v7  ;;  %v3665_v40 = vmul.f32 -1.442695, %v3277_v45  ;;  %v3002_v23 = vmul.f32 %v4922_v43, %v2914_v63  ;;  %v2915_v2 = vmax.f32 %v2686_v50, 0.0  ;;  %v2855_v45 = vpop.f32.mrf.mxu1 }
 0x226   :  { %3746 = vpow2.f32 %v3664_v55  ;;  %v3001_v38 = vmul.f32 %v4922_v43, %v2913_v10  ;;  %v2601_v5 = vadd.f32 %v2600_v14, %v4890_v37  ;;  %v2690_v51 = vadd.f32 %v2689_v18, %v4890_v37 }
 0x227   :  { %3748 = vpow2.f32 %v3663_v24  ;;  %v2603_v6 = vadd.f32 %v2602_v25, %v4890_v37  ;;  %v2692_v31 = vadd.f32 %v2691_v44, %v4890_v37  ;;  %v3105_v9 = vadd.f32 %v2985_v56, %v5015_v27 }
 0x228   :  { %3750 = vpow2.f32 %v3665_v40  ;;  %v3003_v11 = vmul.f32 %v4922_v43, %v2915_v2  ;;  %v2928_v57 = vmax.f32 %v2601_v5, 0.0  ;;  %v3737_v59 = vpop.eup %3736  ;;  %v3123_v39 = vadd.f32 %v2987_v53, %v5019_v1  ;;  %v2766_v1 = vpop.f32.mrf.mxu0  ;;  %v5271_v40 = vld [vmem:[#allocation4_spill] sm:$0xff] }
 0x229   :  { %v2930_v34 = vmax.f32 %v2690_v51, 0.0  ;;  %v2929_v14 = vmax.f32 %v2603_v6, 0.0  ;;  %v2931_v12 = vmax.f32 %v2692_v31, 0.0  ;;  %v5060_v18 = vpop.eup %3738  ;;  %v3097_v8 = vadd.f32 %v3096_v49, %v3000_v41  ;;  %v5070_v49 = vld [vmem:[%s5175_s2 + $0x8] sm:$0xff]  ;;  %v2857_v31 = vpop.f32.mrf.mxu1 }
 0x22a   :  { %v3115_v25 = vadd.f32 %v3114_v60, %v3002_v23  ;;  %v3106_v36 = vadd.f32 %v3105_v9, %v3001_v38  ;;  %v3016_v16 = vmul.f32 %v4938_v29, %v2928_v57  ;;  %v3741_v52 = vpop.eup %3740  ;;  %v3124_v3 = vadd.f32 %v3123_v39, %v3003_v11  ;;  %v2768_v50 = vpop.f32.mrf.mxu0 }
 0x22b   :  { %v3018_v27 = vmul.f32 %v4938_v29, %v2930_v34  ;;  %v3017_v13 = vmul.f32 %v4938_v29, %v2929_v14  ;;  %v3019_v63 = vmul.f32 %v4938_v29, %v2931_v12  ;;  %v3404_v44 = vunpack.c.0.s8 %v5006_v20 }
 0x22c   :  { %v3098_v26 = vadd.f32 %v3097_v8, %v3016_v16  ;;  %v3743_v32 = vpop.eup %3742  ;;  %v3398_v24 = vcombine.low %v3737_v59, %v3741_v52  ;;  %v3207_v23 = vrot.slane %v5070_v49, %v5263_v21  ;;  %v3215_v5 = vrot.slane %v5070_v49, %v5264_v30 }
 0x22d   :  { %v3116_v60 = vadd.f32 %v3115_v25, %v3018_v27  ;;  %v3107_v54 = vadd.f32 %v3106_v36, %v3017_v13  ;;  %v3125_v7 = vadd.f32 %v3124_v3, %v3019_v63  ;;  %v5073_v41 = vsub.s32 %v3404_v44, %v5271_v40  ;;  %v2772_v25 = vpop.f32.mrf.mxu0  ;;  %v2861_v44 = vpop.f32.mrf.mxu1 }
 0x22e   :  { %v3099_v56 = vrot.slane %v3098_v26, 4  ;;  %v3211_v11 = vrot.slane %v5070_v49, %v5265_v62  ;;  %v2761_v57 = vadd.f32 %v5045_v47, %v4882_v0  ;;  %v2850_v59 = vadd.f32 %v2849_v48, %v4882_v0 }
 0x22f   :  { %v3117_v53 = vrot.slane %v3116_v60, 4  ;;  %v3108_v55 = vrot.slane %v3107_v54, 4  ;;  %v3126_v10 = vrot.slane %v3125_v7, 4  ;;  %v2767_v8 = vadd.f32 %v2766_v1, %v4884_v28 }
 0x230   :  { %v3100_v20 = vadd.f32 %v3099_v56, %v3098_v26  ;;  %v5086_v16 = vrot.slane %v3398_v24, %v5073_v41  ;;  %v3399_v52 = vcombine.low %v5060_v18, %v3743_v32  ;;  %v2763_v48 = vadd.f32 %v5055_v15, %v4882_v0  ;;  %v2774_v18 = vpop.f32.mrf.mxu0 }
 0x231   :  { %v3745_v38 = vpop.eup %3744  ;;  %v3118_v2 = vadd.f32 %v3117_v53, %v3116_v60  ;;  %v3109_v51 = vadd.f32 %v3108_v55, %v3107_v54  ;;  %v3127_v6 = vadd.f32 %v3126_v10, %v3125_v7  ;;  %v2884_v1 = vmax.f32 %v2761_v57, 0.0 }
 0x232   :  { %v3338_v9 = vadd.f32 1.0, %v3745_v38  ;;  %v3101_v34 = vrot.slane %v3100_v20, 2  ;;  %v2852_v60 = vadd.f32 %v2851_v46, %v4882_v0  ;;  %v2900_v56 = vmax.f32 %v2767_v8, 0.0  ;;  %v2863_v38 = vpop.f32.mrf.mxu1 }
 0x233   :  { %v3747_v39 = vpop.eup %3746  ;;  %v3119_v14 = vrot.slane %v3118_v2, 2  ;;  %v3110_v12 = vrot.slane %v3109_v51, 2  ;;  %v3128_v27 = vrot.slane %v3127_v6, 2  ;;  %v2856_v55 = vadd.f32 %v2855_v45, %v4884_v28  ;;  %v2778_v45 = vpop.f32.mrf.mxu0 }
 0x234   :  { %v3749_v36 = vpop.eup %3748  ;;  %v3340_v3 = vadd.f32 1.0, %v3747_v39  ;;  %3752 = vrcp.f32 %v3338_v9  ;;  %v3102_v54 = vadd.f32 %v3101_v34, %v3100_v20  ;;  %v5094_v10 = vrot.slane %v3399_v52, %v5073_v41  ;;  %v2867_v8 = vpop.f32.mrf.mxu1 }
 0x235   :  { %v3751_v13 = vpop.eup %3750  ;;  %v3339_v47 = vadd.f32 1.0, %v3749_v36  ;;  %v3111_v63 = vadd.f32 %v3110_v12, %v3109_v51  ;;  %v3120_v7 = vadd.f32 %v3119_v14, %v3118_v2  ;;  %v3129_v53 = vadd.f32 %v3128_v27, %v3127_v6 }
 0x236   :  { %3754 = vrcp.f32 %v3340_v3  ;;  %v3341_v26 = vadd.f32 1.0, %v3751_v13  ;;  %v2886_v15 = vmax.f32 %v2850_v59, 0.0  ;;  %v2885_v24 = vmax.f32 %v2763_v48, 0.0 }
 0x237   :  { %3756 = vrcp.f32 %v3339_v47  ;;  %v3112_v32 = vrot.slane %v3111_v63, 1  ;;  %v2769_v40 = vadd.f32 %v2768_v50, %v4884_v28  ;;  %v2887_v51 = vmax.f32 %v2852_v60, 0.0 }
 0x238   :  { %3758 = vrcp.f32 %v3341_v26  ;;  %v2902_v0 = vmax.f32 %v2856_v55, 0.0  ;;  %v2858_v46 = vadd.f32 %v2857_v31, %v4884_v28  ;;  %v2773_v20 = vadd.f32 %v2772_v25, %v4886_v35 }
 0x239   :  { %v3103_v2 = vrot.slane %v3102_v54, 1  ;;  %v3121_v9 = vrot.slane %v3120_v7, 1  ;;  %v2988_v6 = vmul.f32 %v4916_v19, %v2900_v56  ;;  %v2901_v57 = vmax.f32 %v2769_v40, 0.0 }
 0x23a   :  { %v3113_v39 = vadd.f32 %v3112_v32, %v3111_v63  ;;  %v3130_v34 = vrot.slane %v3129_v53, 1  ;;  %v2990_v59 = vmul.f32 %v4916_v19, %v2902_v0  ;;  %v2916_v14 = vmax.f32 %v2773_v20, 0.0  ;;  %v2780_v63 = vpop.f32.mrf.mxu0 }
 0x23b   :  { %v3219_v50 = vrot.slane %v5070_v49, %v5266_v61  ;;  %v2972_v12 = vmul.f32 %v4894_v33, %v2884_v1  ;;  %v2974_v28 = vmul.f32 %v4894_v33, %v2886_v15  ;;  %v2903_v31 = vmax.f32 %v2858_v46, 0.0 }
 0x23c   :  { %v3430_v25 = vcombine.low %v5086_v16, %v5094_v10  ;;  %v2973_v36 = vmul.f32 %v4894_v33, %v2885_v24  ;;  %v2975_v52 = vmul.f32 %v4894_v33, %v2887_v51  ;;  %v2989_v3 = vmul.f32 %v4916_v19, %v2901_v57 }
 0x23d   :  { %v3104_v27 = vadd.f32 %v3103_v2, %v3102_v54  ;;  %v3122_v13 = vadd.f32 %v3121_v9, %v3120_v7  ;;  %v3132_v47 = vadd.f32 %v2988_v6, %v2972_v12  ;;  %v3004_v61 = vmul.f32 %v4922_v43, %v2916_v14  ;;  %v2869_v7 = vpop.f32.mrf.mxu1 }
 0x23e   :  { %v3261_v48 = vadd.f32 %v3211_v11, %v3113_v39  ;;  %v3131_v26 = vadd.f32 %v3130_v34, %v3129_v53  ;;  %v3150_v1 = vadd.f32 %v2990_v59, %v2974_v28  ;;  %v2862_v16 = vadd.f32 %v2861_v44, %v4886_v35 }
 0x23f   :  { %v2991_v60 = vmul.f32 %v4916_v19, %v2903_v31  ;;  %v2775_v33 = vadd.f32 %v2774_v18, %v4886_v35  ;;  %v2864_v56 = vadd.f32 %v2863_v38, %v4886_v35  ;;  %v2779_v54 = vadd.f32 %v2778_v45, %v4890_v37 }
 0x240   :  { %v3141_v55 = vadd.f32 %v2989_v3, %v2973_v36  ;;  %v2918_v10 = vmax.f32 %v2862_v16, 0.0  ;;  %v2868_v15 = vadd.f32 %v2867_v8, %v4890_v37  ;;  %v2781_v62 = vadd.f32 %v2780_v63, %v4890_v37 }
 0x241   :  { %v3753_v32 = vpop.eup %3752  ;;  %v3133_v53 = vadd.f32 %v3132_v47, %v3004_v61  ;;  %v2917_v24 = vmax.f32 %v2775_v33, 0.0  ;;  %v2919_v44 = vmax.f32 %v2864_v56, 0.0  ;;  %v2932_v40 = vmax.f32 %v2779_v54, 0.0 }
 0x242   :  { %v3006_v18 = vmul.f32 %v4922_v43, %v2918_v10  ;;  %v2934_v51 = vmax.f32 %v2868_v15, 0.0  ;;  %v2933_v35 = vmax.f32 %v2781_v62, 0.0  ;;  %v2870_v38 = vadd.f32 %v2869_v7, %v4890_v37 }
 0x243   :  { %v3755_v11 = vpop.eup %3754  ;;  %v3005_v20 = vmul.f32 %v4922_v43, %v2917_v24  ;;  %v3007_v2 = vmul.f32 %v4922_v43, %v2919_v44  ;;  %v3020_v9 = vmul.f32 %v4938_v29, %v2932_v40  ;;  %v3263_v59 = vadd.f32 %v3219_v50, %v3131_v26 }
 0x244   :  { %v3757_v19 = vpop.eup %3756  ;;  %v3151_v57 = vadd.f32 %v3150_v1, %v3006_v18  ;;  %v3022_v45 = vmul.f32 %v4938_v29, %v2934_v51  ;;  %v3021_v39 = vmul.f32 %v4938_v29, %v2933_v35  ;;  %v3159_v28 = vadd.f32 %v2991_v60, %v2975_v52 }
 0x245   :  { %v3759_v0 = vpop.eup %3758  ;;  %v3400_v46 = vcombine.low %v3753_v32, %v3757_v19  ;;  %v3142_v14 = vadd.f32 %v3141_v55, %v3005_v20  ;;  %v3134_v12 = vadd.f32 %v3133_v53, %v3020_v9  ;;  %v2935_v8 = vmax.f32 %v2870_v38, 0.0 }
 0x246   :  { %v3401_v6 = vcombine.low %v3755_v11, %v3759_v0  ;;  %v3152_v31 = vadd.f32 %v3151_v57, %v3022_v45  ;;  %v3260_v43 = vadd.f32 %v3207_v23, %v3104_v27  ;;  %v3262_v36 = vadd.f32 %v3215_v5, %v3122_v13 }
 0x247   :  { %v3422_v34 = vrot.slane %v3400_v46, %v5073_v41  ;;  %v3135_v3 = vrot.slane %v3134_v12, 4  ;;  %v3143_v47 = vadd.f32 %v3142_v14, %v3021_v39  ;;  %v3160_v63 = vadd.f32 %v3159_v28, %v3007_v2 }
 0x248   :  { %v3429_v37 = vrot.slane %v3401_v6, %v5073_v41  ;;  %v3153_v50 = vrot.slane %v3152_v31, 4  ;;  %v3023_v26 = vmul.f32 %v4938_v29, %v2935_v8  ;;  %v3438_v1 = vrot.slane %v3430_v25, %v5073_v41 }
 0x249   :  { %v3279_v52 = vadd.f32 %v4912_v22, %v3261_v48  ;;  %v3136_v16 = vadd.f32 %v3135_v3, %v3134_v12  ;;  %v3144_v60 = vrot.slane %v3143_v47, 4  ;;  %v3281_v23 = vadd.f32 %v4912_v22, %v3263_v59 }
 0x24a   :  { %v3431_v61 = vcombine.low %v3422_v34, %v3429_v37  ;;  %v3154_v27 = vadd.f32 %v3153_v50, %v3152_v31  ;;  %v3161_v30 = vadd.f32 %v3160_v63, %v3023_v26  ;;  %v3278_v5 = vadd.f32 %v4912_v22, %v3260_v43 }
 0x24b   :  { %v3137_v13 = vrot.slane %v3136_v16, 2  ;;  %v3145_v33 = vadd.f32 %v3144_v60, %v3143_v47  ;;  %v3280_v54 = vadd.f32 %v4912_v22, %v3262_v36  ;;  %v3667_v25 = vmul.f32 -1.442695, %v3279_v52 }
 0x24c   :  { %v3445_v21 = vrot.slane %v3431_v61, %v5073_v41  ;;  %v3155_v29 = vrot.slane %v3154_v27, 2  ;;  %v3162_v7 = vrot.slane %v3161_v30, 4  ;;  %v3669_v55 = vmul.f32 -1.442695, %v3281_v23 }
 0x24d   :  { %v3138_v32 = vadd.f32 %v3137_v13, %v3136_v16  ;;  %v3146_v48 = vrot.slane %v3145_v33, 2  ;;  %v3666_v62 = vmul.f32 -1.442695, %v3278_v5  ;;  %v3223_v53 = vrot.slane %v5070_v49, %v5267_v58 }
 0x24e   :  { %v3446_v56 = vcombine.low %v3438_v1, %v3445_v21  ;;  %v3156_v10 = vadd.f32 %v3155_v29, %v3154_v27  ;;  %v3163_v15 = vadd.f32 %v3162_v7, %v3161_v30  ;;  %v3668_v44 = vmul.f32 -1.442695, %v3280_v54 }
 0x24f   :  { %v3139_v11 = vrot.slane %v3138_v32, 1  ;;  %v3147_v24 = vadd.f32 %v3146_v48, %v3145_v33  ;;  %v3231_v19 = vrot.slane %v5070_v49, %v5268_v4  ;;  %3760 = vpow2.f32 %v3667_v25 }
 0x250   :  { %3498 = vst [vmem:[%s5177_s10] sm:$0xff] %v3446_v56  ;;  %v3157_v40 = vrot.slane %v3156_v10, 1  ;;  %v3164_v18 = vrot.slane %v3163_v15, 2  ;;  %v3227_v38 = vrot.slane %v5070_v49, %v5269_v42  ;;  %3762 = vpow2.f32 %v3669_v55 }
 0x251   :  { %v3140_v51 = vadd.f32 %v3139_v11, %v3138_v32  ;;  %v3148_v35 = vrot.slane %v3147_v24, 1  ;;  %3764 = vpow2.f32 %v3666_v62  ;;  %v3235_v6 = vrot.slane %v5070_v49, %v5270_v17 }
 0x252   :  { %v3158_v0 = vadd.f32 %v3157_v40, %v3156_v10  ;;  %v3165_v46 = vadd.f32 %v3164_v18, %v3163_v15  ;;  %3766 = vpow2.f32 %v3668_v44 }
 0x253   :  { %v3264_v20 = vadd.f32 %v3223_v53, %v3140_v51  ;;  %v3149_v2 = vadd.f32 %v3148_v35, %v3147_v24 }
 0x254   :  { %v3266_v58 = vadd.f32 %v3231_v19, %v3158_v0  ;;  %v3166_v9 = vrot.slane %v3165_v46, 1 }
 0x255   :  { %v3282_v4 = vadd.f32 %v4912_v22, %v3264_v20  ;;  %v3265_v57 = vadd.f32 %v3227_v38, %v3149_v2 }
 0x256   :  { %v3284_v45 = vadd.f32 %v4912_v22, %v3266_v58  ;;  %v3167_v39 = vadd.f32 %v3166_v9, %v3165_v46 }
 0x257   :  { %v3670_v34 = vmul.f32 -1.442695, %v3282_v4  ;;  %v3283_v42 = vadd.f32 %v4912_v22, %v3265_v57 }
 0x258   :  { %v3672_v59 = vmul.f32 -1.442695, %v3284_v45  ;;  %v3267_v14 = vadd.f32 %v3235_v6, %v3167_v39 }
 0x259   :  { %3768 = vpow2.f32 %v3670_v34  ;;  %v3671_v12 = vmul.f32 -1.442695, %v3283_v42 }
 0x25a   :  { %3770 = vpow2.f32 %v3672_v59  ;;  %v3285_v37 = vadd.f32 %v4912_v22, %v3267_v14 }
 0x25b   :  { %3772 = vpow2.f32 %v3671_v12 }
 0x25c   :  { %v3673_v28 = vmul.f32 -1.442695, %v3285_v37  ;;  %v3761_v31 = vpop.eup %3760 }
 0x25d   :  { %v3763_v17 = vpop.eup %3762  ;;  %v3343_v43 = vadd.f32 1.0, %v3761_v31 }
 0x25e   :  { %3774 = vpow2.f32 %v3673_v28  ;;  %v3765_v49 = vpop.eup %3764  ;;  %v3345_v36 = vadd.f32 1.0, %v3763_v17 }
 0x25f   :  { %v3767_v8 = vpop.eup %3766  ;;  %v3342_v3 = vadd.f32 1.0, %v3765_v49  ;;  %3776 = vrcp.f32 %v3343_v43 }
 0x260   :  { %v3344_v47 = vadd.f32 1.0, %v3767_v8  ;;  %3778 = vrcp.f32 %v3345_v36 }
 0x261   :  { %3780 = vrcp.f32 %v3342_v3 }
 0x262   :  { %3782 = vrcp.f32 %v3344_v47 }
 0x266   :  { %v3769_v61 = vpop.eup %3768 }
 0x267   :  { %v3771_v63 = vpop.eup %3770  ;;  %v3346_v50 = vadd.f32 1.0, %v3769_v61 }
 0x268   :  { %v3773_v26 = vpop.eup %3772  ;;  %v3348_v22 = vadd.f32 1.0, %v3771_v63 }
 0x269   :  { %v3347_v1 = vadd.f32 1.0, %v3773_v26  ;;  %3784 = vrcp.f32 %v3346_v50 }
 0x26b   :  { %v3775_v52 = vpop.eup %3774  ;;  %3786 = vrcp.f32 %v3347_v1 }
 0x26c   :  { %v3349_v16 = vadd.f32 1.0, %v3775_v52  ;;  %3788 = vrcp.f32 %v3348_v22  ;;  %v3777_v60 = vpop.eup %3776 }
 0x26d   :  { %v3779_v21 = vpop.eup %3778 }
 0x26e   :  { %3790 = vrcp.f32 %v3349_v16  ;;  %v3781_v23 = vpop.eup %3780 }
 0x26f   :  { %v3783_v27 = vpop.eup %3782  ;;  %v3447_v30 = vcombine.low %v3781_v23, %v3777_v60 }
 0x270   :  { %v3448_v5 = vcombine.low %v3783_v27, %v3779_v21 }
 0x271   :  { %v3457_v29 = vrot.slane %v3447_v30, %v5073_v41 }
 0x272   :  { %v3464_v7 = vrot.slane %v3448_v5, %v5073_v41 }
 0x274   :  { %v3479_v55 = vcombine.low %v3457_v29, %v3464_v7 }
 0x276   :  { %v3785_v13 = vpop.eup %3784  ;;  %v3487_v62 = vrot.slane %v3479_v55, %v5073_v41 }
 0x278   :  { %v3787_v33 = vpop.eup %3786 }
 0x279   :  { %v3449_v56 = vcombine.low %v3785_v13, %v3787_v33  ;;  %v3789_v54 = vpop.eup %3788 }
 0x27b   :  { %v3791_v25 = vpop.eup %3790  ;;  %v3471_v32 = vrot.slane %v3449_v56, %v5073_v41 }
 0x27c   :  { %v3450_v48 = vcombine.low %v3789_v54, %v3791_v25 }
 0x27e   :  { %v3478_v10 = vrot.slane %v3450_v48, %v5073_v41 }
 0x280   :  { %v3480_v15 = vcombine.low %v3471_v32, %v3478_v10 }
 0x282   :  { %v3494_v11 = vrot.slane %v3480_v15, %v5073_v41 }
 0x284   :  { %v3495_v53 = vcombine.low %v3487_v62, %v3494_v11 }
 0x286   :  { %3499 = vst [vmem:[%s5177_s10 + $0x8] sm:$0xff] %v3495_v53 }

</bundles_post_ra>
